<compile_context>
chip_gen: v7x
topology: tpu7x:2x2x1
jax: 0.10.0
libtpu: 0.0.40
codegen_flags: <defaults>
</compile_context>

<pallas_src>
import functools
import math

import jax
import jax.numpy as jnp
from jax.experimental import pallas as pl
from jax.experimental.pallas import tpu as pltpu

_LANE = 128


def _round_up(x, m):
    return (x + m - 1) // m * m


def _conv2d_kernel(x_ref, w_ref, b_ref, o_ref, acc_ref, *, k, stride, th, wo, cin_p):
    """One (image n, row-tile h, cout-tile c) block.

    x_ref  : (1, 1, TH_in, Wp, Cin_p)  haloed input row tile (compute dtype)
    w_ref  : (k*k, Cin_p, TCO)         scaled weights (compute dtype)
    b_ref  : (1, TCO)                  scaled bias (f32)
    o_ref  : (1, TH, Wo, TCO)          output block
    acc_ref: (TH*Wo, TCO) f32          VMEM scratch accumulator
    """
    hwin = (th - 1) * stride + 1
    wwin = (wo - 1) * stride + 1
    # k*k shifted-window matmuls (im2col-free conv); each tap is a lane-dense
    # (TH*Wo, Cin_p) x (Cin_p, TCO) MXU matmul accumulated in f32 VMEM scratch.
    tap = 0
    for kh in range(k):
        for kw in range(k):
            win = x_ref[0, 0, pl.ds(kh, hwin), pl.ds(kw, wwin), :]
            # TODO(synk): for stride > 1, pre-stride the input (or fold the stride
            # into the grid) instead of this value-level strided subsample.
            patch = win[::stride, ::stride, :] if stride > 1 else win
            contrib = jnp.dot(
                patch.reshape(th * wo, cin_p),
                w_ref[kh * k + kw],
                preferred_element_type=jnp.float32,
            )
            if tap == 0:
                acc_ref[...] = contrib
            else:
                acc_ref[...] += contrib
            tap += 1
    out = acc_ref[...] + b_ref[0]
    tco = o_ref.shape[-1]
    o_ref[0] = out.reshape(th, wo, tco).astype(o_ref.dtype)


def _pick_block_h(ho, wp, cin_p, k, stride, itemsize, budget_bytes=4 * 1024 * 1024):
    """Largest divisor of Ho whose haloed input tile stays under budget_bytes."""
    row_bytes = wp * cin_p * itemsize
    max_in_rows = max(k, budget_bytes // max(row_bytes, 1))
    th_max = max(1, min(ho, (max_in_rows - (k - stride)) // max(stride, 1)))
    for t in range(th_max, 0, -1):
        if ho % t == 0:
            return t
    return 1


def conv2d_pallas(x, weight, bias, *, stride=1, padding=0, scale_w=False,
                  lr_mult=None, block_h=None, block_cout=None,
                  compute_dtype=jnp.float32):
    """PyTorch-style Conv2d forward.

    x: (N, Cin, H, W);  weight: (Cout, Cin, k, k);  bias: (Cout,) or None.
    Returns (N, Cout, Ho, Wo) in x.dtype.
    """
    if lr_mult is None:
        lr_mult = 1.0
    stride = int(stride)
    Cout, Cin, k, _ = weight.shape
    w_mult = lr_mult / math.sqrt(Cin * k ** 2) if scale_w else lr_mult
    b_mult = lr_mult

    N, _, H, W = x.shape
    Ho = (H + 2 * padding - k) // stride + 1
    Wo = (W + 2 * padding - k) // stride + 1
    Hp, Wp = H + 2 * padding, W + 2 * padding

    # Lane-dense channel padding (lane width = 128).
    Cin_p = _round_up(Cin, _LANE)
    Cout_p = _round_up(Cout, _LANE)

    itemsize = jnp.dtype(compute_dtype).itemsize
    if block_cout is None:
        TCO = 256 if Cout_p % 256 == 0 else 128
    else:
        TCO = block_cout
    assert Cout_p % TCO == 0, "block_cout must divide padded Cout"
    n_co = Cout_p // TCO

    TH = _pick_block_h(Ho, Wp, Cin_p, k, stride, itemsize) if block_h is None else block_h
    assert Ho % TH == 0, "block_h must divide the output height"
    n_h = Ho // TH
    TH_in = (TH - 1) * stride + k        # input rows per output-row tile (incl. halo)

    # --- wrapper glue: NCHW -> padded NHWC with padded channels, then gather
    # overlapping (haloed) row tiles so the kernel only needs Blocked BlockSpecs.
    # TODO(synk): keep activations NHWC end-to-end across layers and fold the
    # spatial pad / halo into the kernel's index_map to avoid these HBM passes.
    x_nhwc = jnp.transpose(x, (0, 2, 3, 1)).astype(compute_dtype)          # (N,H,W,Cin)
    x_pad = jnp.pad(x_nhwc, ((0, 0), (padding, padding), (padding, padding),
                             (0, Cin_p - Cin)))                            # (N,Hp,Wp,Cin_p)
    row_idx = (jnp.arange(n_h) * (TH * stride))[:, None] + jnp.arange(TH_in)[None, :]
    x_tiles = x_pad[:, row_idx]                                            # (N,n_h,TH_in,Wp,Cin_p)

    w_scaled = weight.astype(jnp.float32) * w_mult
    w_kkio = jnp.transpose(w_scaled, (2, 3, 1, 0))                         # (k,k,Cin,Cout)
    w_kkio = jnp.pad(w_kkio, ((0, 0), (0, 0), (0, Cin_p - Cin), (0, Cout_p - Cout)))
    w_kkio = w_kkio.reshape(k * k, Cin_p, Cout_p).astype(compute_dtype)

    b = bias if bias is not None else jnp.zeros((Cout,), jnp.float32)
    b_scaled = jnp.pad(b.astype(jnp.float32) * b_mult,
                       (0, Cout_p - Cout)).reshape(1, Cout_p)

    kernel = functools.partial(_conv2d_kernel, k=k, stride=stride,
                               th=TH, wo=Wo, cin_p=Cin_p)

    # Explicit VMEM budget (default double-buffered in/out tiles + scratch), with
    # headroom, capped below v7x's 64 MiB physical VMEM.
    out_itemsize = jnp.dtype(x.dtype).itemsize
    x_tile_b = TH_in * Wp * Cin_p * itemsize
    w_tile_b = k * k * Cin_p * TCO * itemsize
    o_tile_b = TH * Wo * TCO * out_itemsize
    acc_b = TH * Wo * TCO * 4
    vmem_need = 2 * (x_tile_b + w_tile_b + o_tile_b + TCO * 4) + acc_b
    vmem_limit = int(min(60 * 1024 * 1024, max(2 * vmem_need, 16 * 1024 * 1024)))

    out_nhwc = pl.pallas_call(
        kernel,
        out_shape=jax.ShapeDtypeStruct((N, Ho, Wo, Cout_p), x.dtype),
        grid_spec=pltpu.PrefetchScalarGridSpec(
            num_scalar_prefetch=0,
            grid=(N, n_h, n_co),
            in_specs=[
                pl.BlockSpec((1, 1, TH_in, Wp, Cin_p), lambda n, h, c: (n, h, 0, 0, 0)),
                # NOTE: the activation block index is constant across the innermost
                # Cout-tile axis (no re-fetch there); when n_co == 1 the weight/bias
                # block indices are constant for the whole grid and are fetched once.
                pl.BlockSpec((k * k, Cin_p, TCO), lambda n, h, c: (0, 0, c)),
                pl.BlockSpec((1, TCO), lambda n, h, c: (0, c)),
            ],
            out_specs=pl.BlockSpec((1, TH, Wo, TCO), lambda n, h, c: (n, h, 0, c)),
            scratch_shapes=[pltpu.VMEM((TH * Wo, TCO), jnp.float32)],
        ),
        compiler_params=pltpu.CompilerParams(
            dimension_semantics=("parallel", "parallel", "parallel"),
            vmem_limit_bytes=vmem_limit,
        ),
    )(x_tiles, w_kkio, b_scaled)

    out = out_nhwc[..., :Cout]                  # drop channel padding
    return jnp.transpose(out, (0, 3, 1, 2))     # back to NCHW


if __name__ == "__main__":
    key = jax.random.PRNGKey(0)
    kx, kw, kb = jax.random.split(key, 3)

    N, Cin, H, W = 2, 4, 16, 16
    Cout, k, stride, padding = 8, 3, 1, 1

    x = jax.random.normal(kx, (N, Cin, H, W), dtype=jnp.float32)
    weight = jax.random.normal(kw, (Cout, Cin, k, k), dtype=jnp.float32)
    bias = jax.random.normal(kb, (Cout,), dtype=jnp.float32)

    # f32 compute path; block_h=8 -> 2 row tiles per image to exercise the tiled grid.
    out = conv2d_pallas(x, weight, bias, stride=stride, padding=padding,
                        scale_w=True, lr_mult=1.0, block_h=8)
    jax.block_until_ready(out)

    # Cross-check against XLA's conv.
    w_mult = 1.0 / math.sqrt(Cin * k ** 2)
    ref = jax.lax.conv_general_dilated(
        x, weight * w_mult, window_strides=(stride, stride),
        padding=((padding, padding), (padding, padding)),
        dimension_numbers=("NCHW", "OIHW", "NCHW"),
    ) + bias.reshape(1, Cout, 1, 1)
    assert out.shape == (N, Cout, H, W)
    assert jnp.allclose(out, ref, atol=1e-4, rtol=1e-4)

    # bf16-compute path (f32 accumulation) — loose tolerance.
    out_bf16 = conv2d_pallas(x, weight, bias, stride=stride, padding=padding,
                             scale_w=True, lr_mult=1.0, block_h=8,
                             compute_dtype=jnp.bfloat16)
    jax.block_until_ready(out_bf16)
    assert out_bf16.shape == (N, Cout, H, W)
    assert float(jnp.max(jnp.abs(out_bf16 - ref))) < 0.2

    print("KERNEL_OK")
</pallas_src>

<mosaic_0001>
module attributes {stable_mosaic.version = 11 : i64} {
  func.func @_conv2d_kernel(%arg0: i32, %arg1: i32, %arg2: i32, %arg3: memref<1x1x10x18x128xf32, #tpu.memory_space<vmem>>, %arg4: memref<9x128x128xf32, #tpu.memory_space<vmem>>, %arg5: memref<1x128xf32, #tpu.memory_space<vmem>>, %arg6: memref<1x8x16x128xf32, #tpu.memory_space<vmem>>, %arg7: memref<128x128xf32, #tpu.memory_space<vmem>>) attributes {dimension_semantics = [#tpu.dimension_semantics<parallel>, #tpu.dimension_semantics<parallel>, #tpu.dimension_semantics<parallel>], iteration_bounds = array<i64: 2, 2, 1>, scalar_prefetch = 0 : i64, scratch_operands = 1 : i64, tpu.core_type = #tpu.core_type<tc>, window_params = [{transform_indices = @transform_0, window_bounds = array<i64: 1, 1, 10, 18, 128>}, {transform_indices = @transform_1, window_bounds = array<i64: 9, 128, 128>}, {transform_indices = @transform_2, window_bounds = array<i64: 1, 128>}, {transform_indices = @transform_3, window_bounds = array<i64: 1, 8, 16, 128>}]} {
    %c0 = arith.constant 0 : index
    %c0_0 = arith.constant 0 : index
    %c0_1 = arith.constant 0 : index
    %c0_2 = arith.constant 0 : index
    %c0_3 = arith.constant 0 : index
    %0 = vector.load %arg3[%c0, %c0_0, %c0_1, %c0_2, %c0_3] : memref<1x1x10x18x128xf32, #tpu.memory_space<vmem>>, vector<1x1x8x16x128xf32>
    %1 = vector.shape_cast %0 : vector<1x1x8x16x128xf32> to vector<8x16x128xf32>
    %2 = vector.shape_cast %1 : vector<8x16x128xf32> to vector<128x128xf32>
    %c0_4 = arith.constant 0 : index
    %c0_5 = arith.constant 0 : index
    %c0_6 = arith.constant 0 : index
    %3 = vector.load %arg4[%c0_4, %c0_5, %c0_6] : memref<9x128x128xf32, #tpu.memory_space<vmem>>, vector<1x128x128xf32>
    %4 = vector.shape_cast %3 : vector<1x128x128xf32> to vector<128x128xf32>
    %cst = arith.constant dense<0.000000e+00> : vector<128x128xf32>
    %5 = tpu.matmul %2, %4, %cst {dimension_numbers = #tpu.dot_dimension_numbers<[1], [0], [0], [1], [0, 0, 1, 1], [], []>} : vector<128x128xf32>, vector<128x128xf32>, vector<128x128xf32> -> vector<128x128xf32>
    %c0_7 = arith.constant 0 : index
    %c0_8 = arith.constant 0 : index
    %6 = vector.load %arg7[%c0_7, %c0_8] : memref<128x128xf32, #tpu.memory_space<vmem>>, vector<128x128xf32>
    tpu.vector_store %arg7[%c0_7, %c0_8], %5 {strides = array<i32>} : memref<128x128xf32, #tpu.memory_space<vmem>>, vector<128x128xf32>,
    %c0_9 = arith.constant 0 : index
    %c0_10 = arith.constant 0 : index
    %c0_11 = arith.constant 0 : index
    %c1 = arith.constant 1 : index
    %c0_12 = arith.constant 0 : index
    %7 = vector.load %arg3[%c0_9, %c0_10, %c0_11, %c1, %c0_12] : memref<1x1x10x18x128xf32, #tpu.memory_space<vmem>>, vector<1x1x8x16x128xf32>
    %8 = vector.shape_cast %7 : vector<1x1x8x16x128xf32> to vector<8x16x128xf32>
    %9 = vector.shape_cast %8 : vector<8x16x128xf32> to vector<128x128xf32>
    %c1_13 = arith.constant 1 : index
    %c0_14 = arith.constant 0 : index
    %c0_15 = arith.constant 0 : index
    %10 = vector.load %arg4[%c1_13, %c0_14, %c0_15] : memref<9x128x128xf32, #tpu.memory_space<vmem>>, vector<1x128x128xf32>
    %11 = vector.shape_cast %10 : vector<1x128x128xf32> to vector<128x128xf32>
    %cst_16 = arith.constant dense<0.000000e+00> : vector<128x128xf32>
    %12 = tpu.matmul %9, %11, %cst_16 {dimension_numbers = #tpu.dot_dimension_numbers<[1], [0], [0], [1], [0, 0, 1, 1], [], []>} : vector<128x128xf32>, vector<128x128xf32>, vector<128x128xf32> -> vector<128x128xf32>
    %c0_17 = arith.constant 0 : index
    %c0_18 = arith.constant 0 : index
    %13 = vector.load %arg7[%c0_17, %c0_18] : memref<128x128xf32, #tpu.memory_space<vmem>>, vector<128x128xf32>
    %14 = arith.addf %13, %12 : vector<128x128xf32>
    %c0_19 = arith.constant 0 : index
    %c0_20 = arith.constant 0 : index
    %15 = vector.load %arg7[%c0_19, %c0_20] : memref<128x128xf32, #tpu.memory_space<vmem>>, vector<128x128xf32>
    tpu.vector_store %arg7[%c0_19, %c0_20], %14 {strides = array<i32>} : memref<128x128xf32, #tpu.memory_space<vmem>>, vector<128x128xf32>,
    %c0_21 = arith.constant 0 : index
    %c0_22 = arith.constant 0 : index
    %c0_23 = arith.constant 0 : index
    %c2 = arith.constant 2 : index
    %c0_24 = arith.constant 0 : index
    %16 = vector.load %arg3[%c0_21, %c0_22, %c0_23, %c2, %c0_24] : memref<1x1x10x18x128xf32, #tpu.memory_space<vmem>>, vector<1x1x8x16x128xf32>
    %17 = vector.shape_cast %16 : vector<1x1x8x16x128xf32> to vector<8x16x128xf32>
    %18 = vector.shape_cast %17 : vector<8x16x128xf32> to vector<128x128xf32>
    %c2_25 = arith.constant 2 : index
    %c0_26 = arith.constant 0 : index
    %c0_27 = arith.constant 0 : index
    %19 = vector.load %arg4[%c2_25, %c0_26, %c0_27] : memref<9x128x128xf32, #tpu.memory_space<vmem>>, vector<1x128x128xf32>
    %20 = vector.shape_cast %19 : vector<1x128x128xf32> to vector<128x128xf32>
    %cst_28 = arith.constant dense<0.000000e+00> : vector<128x128xf32>
    %21 = tpu.matmul %18, %20, %cst_28 {dimension_numbers = #tpu.dot_dimension_numbers<[1], [0], [0], [1], [0, 0, 1, 1], [], []>} : vector<128x128xf32>, vector<128x128xf32>, vector<128x128xf32> -> vector<128x128xf32>
    %c0_29 = arith.constant 0 : index
    %c0_30 = arith.constant 0 : index
    %22 = vector.load %arg7[%c0_29, %c0_30] : memref<128x128xf32, #tpu.memory_space<vmem>>, vector<128x128xf32>
    %23 = arith.addf %22, %21 : vector<128x128xf32>
    %c0_31 = arith.constant 0 : index
    %c0_32 = arith.constant 0 : index
    %24 = vector.load %arg7[%c0_31, %c0_32] : memref<128x128xf32, #tpu.memory_space<vmem>>, vector<128x128xf32>
    tpu.vector_store %arg7[%c0_31, %c0_32], %23 {strides = array<i32>} : memref<128x128xf32, #tpu.memory_space<vmem>>, vector<128x128xf32>,
    %c0_33 = arith.constant 0 : index
    %c0_34 = arith.constant 0 : index
    %c1_35 = arith.constant 1 : index
    %c0_36 = arith.constant 0 : index
    %c0_37 = arith.constant 0 : index
    %25 = vector.load %arg3[%c0_33, %c0_34, %c1_35, %c0_36, %c0_37] : memref<1x1x10x18x128xf32, #tpu.memory_space<vmem>>, vector<1x1x8x16x128xf32>
    %26 = vector.shape_cast %25 : vector<1x1x8x16x128xf32> to vector<8x16x128xf32>
    %27 = vector.shape_cast %26 : vector<8x16x128xf32> to vector<128x128xf32>
    %c3 = arith.constant 3 : index
    %c0_38 = arith.constant 0 : index
    %c0_39 = arith.constant 0 : index
    %28 = vector.load %arg4[%c3, %c0_38, %c0_39] : memref<9x128x128xf32, #tpu.memory_space<vmem>>, vector<1x128x128xf32>
    %29 = vector.shape_cast %28 : vector<1x128x128xf32> to vector<128x128xf32>
    %cst_40 = arith.constant dense<0.000000e+00> : vector<128x128xf32>
    %30 = tpu.matmul %27, %29, %cst_40 {dimension_numbers = #tpu.dot_dimension_numbers<[1], [0], [0], [1], [0, 0, 1, 1], [], []>} : vector<128x128xf32>, vector<128x128xf32>, vector<128x128xf32> -> vector<128x128xf32>
    %c0_41 = arith.constant 0 : index
    %c0_42 = arith.constant 0 : index
    %31 = vector.load %arg7[%c0_41, %c0_42] : memref<128x128xf32, #tpu.memory_space<vmem>>, vector<128x128xf32>
    %32 = arith.addf %31, %30 : vector<128x128xf32>
    %c0_43 = arith.constant 0 : index
    %c0_44 = arith.constant 0 : index
    %33 = vector.load %arg7[%c0_43, %c0_44] : memref<128x128xf32, #tpu.memory_space<vmem>>, vector<128x128xf32>
    tpu.vector_store %arg7[%c0_43, %c0_44], %32 {strides = array<i32>} : memref<128x128xf32, #tpu.memory_space<vmem>>, vector<128x128xf32>,
    %c0_45 = arith.constant 0 : index
    %c0_46 = arith.constant 0 : index
    %c1_47 = arith.constant 1 : index
    %c1_48 = arith.constant 1 : index
    %c0_49 = arith.constant 0 : index
    %34 = vector.load %arg3[%c0_45, %c0_46, %c1_47, %c1_48, %c0_49] : memref<1x1x10x18x128xf32, #tpu.memory_space<vmem>>, vector<1x1x8x16x128xf32>
    %35 = vector.shape_cast %34 : vector<1x1x8x16x128xf32> to vector<8x16x128xf32>
    %36 = vector.shape_cast %35 : vector<8x16x128xf32> to vector<128x128xf32>
    %c4 = arith.constant 4 : index
    %c0_50 = arith.constant 0 : index
    %c0_51 = arith.constant 0 : index
    %37 = vector.load %arg4[%c4, %c0_50, %c0_51] : memref<9x128x128xf32, #tpu.memory_space<vmem>>, vector<1x128x128xf32>
    %38 = vector.shape_cast %37 : vector<1x128x128xf32> to vector<128x128xf32>
    %cst_52 = arith.constant dense<0.000000e+00> : vector<128x128xf32>
    %39 = tpu.matmul %36, %38, %cst_52 {dimension_numbers = #tpu.dot_dimension_numbers<[1], [0], [0], [1], [0, 0, 1, 1], [], []>} : vector<128x128xf32>, vector<128x128xf32>, vector<128x128xf32> -> vector<128x128xf32>
    %c0_53 = arith.constant 0 : index
    %c0_54 = arith.constant 0 : index
    %40 = vector.load %arg7[%c0_53, %c0_54] : memref<128x128xf32, #tpu.memory_space<vmem>>, vector<128x128xf32>
    %41 = arith.addf %40, %39 : vector<128x128xf32>
    %c0_55 = arith.constant 0 : index
    %c0_56 = arith.constant 0 : index
    %42 = vector.load %arg7[%c0_55, %c0_56] : memref<128x128xf32, #tpu.memory_space<vmem>>, vector<128x128xf32>
    tpu.vector_store %arg7[%c0_55, %c0_56], %41 {strides = array<i32>} : memref<128x128xf32, #tpu.memory_space<vmem>>, vector<128x128xf32>,
    %c0_57 = arith.constant 0 : index
    %c0_58 = arith.constant 0 : index
    %c1_59 = arith.constant 1 : index
    %c2_60 = arith.constant 2 : index
    %c0_61 = arith.constant 0 : index
    %43 = vector.load %arg3[%c0_57, %c0_58, %c1_59, %c2_60, %c0_61] : memref<1x1x10x18x128xf32, #tpu.memory_space<vmem>>, vector<1x1x8x16x128xf32>
    %44 = vector.shape_cast %43 : vector<1x1x8x16x128xf32> to vector<8x16x128xf32>
    %45 = vector.shape_cast %44 : vector<8x16x128xf32> to vector<128x128xf32>
    %c5 = arith.constant 5 : index
    %c0_62 = arith.constant 0 : index
    %c0_63 = arith.constant 0 : index
    %46 = vector.load %arg4[%c5, %c0_62, %c0_63] : memref<9x128x128xf32, #tpu.memory_space<vmem>>, vector<1x128x128xf32>
    %47 = vector.shape_cast %46 : vector<1x128x128xf32> to vector<128x128xf32>
    %cst_64 = arith.constant dense<0.000000e+00> : vector<128x128xf32>
    %48 = tpu.matmul %45, %47, %cst_64 {dimension_numbers = #tpu.dot_dimension_numbers<[1], [0], [0], [1], [0, 0, 1, 1], [], []>} : vector<128x128xf32>, vector<128x128xf32>, vector<128x128xf32> -> vector<128x128xf32>
    %c0_65 = arith.constant 0 : index
    %c0_66 = arith.constant 0 : index
    %49 = vector.load %arg7[%c0_65, %c0_66] : memref<128x128xf32, #tpu.memory_space<vmem>>, vector<128x128xf32>
    %50 = arith.addf %49, %48 : vector<128x128xf32>
    %c0_67 = arith.constant 0 : index
    %c0_68 = arith.constant 0 : index
    %51 = vector.load %arg7[%c0_67, %c0_68] : memref<128x128xf32, #tpu.memory_space<vmem>>, vector<128x128xf32>
    tpu.vector_store %arg7[%c0_67, %c0_68], %50 {strides = array<i32>} : memref<128x128xf32, #tpu.memory_space<vmem>>, vector<128x128xf32>,
    %c0_69 = arith.constant 0 : index
    %c0_70 = arith.constant 0 : index
    %c2_71 = arith.constant 2 : index
    %c0_72 = arith.constant 0 : index
    %c0_73 = arith.constant 0 : index
    %52 = vector.load %arg3[%c0_69, %c0_70, %c2_71, %c0_72, %c0_73] : memref<1x1x10x18x128xf32, #tpu.memory_space<vmem>>, vector<1x1x8x16x128xf32>
    %53 = vector.shape_cast %52 : vector<1x1x8x16x128xf32> to vector<8x16x128xf32>
    %54 = vector.shape_cast %53 : vector<8x16x128xf32> to vector<128x128xf32>
    %c6 = arith.constant 6 : index
    %c0_74 = arith.constant 0 : index
    %c0_75 = arith.constant 0 : index
    %55 = vector.load %arg4[%c6, %c0_74, %c0_75] : memref<9x128x128xf32, #tpu.memory_space<vmem>>, vector<1x128x128xf32>
    %56 = vector.shape_cast %55 : vector<1x128x128xf32> to vector<128x128xf32>
    %cst_76 = arith.constant dense<0.000000e+00> : vector<128x128xf32>
    %57 = tpu.matmul %54, %56, %cst_76 {dimension_numbers = #tpu.dot_dimension_numbers<[1], [0], [0], [1], [0, 0, 1, 1], [], []>} : vector<128x128xf32>, vector<128x128xf32>, vector<128x128xf32> -> vector<128x128xf32>
    %c0_77 = arith.constant 0 : index
    %c0_78 = arith.constant 0 : index
    %58 = vector.load %arg7[%c0_77, %c0_78] : memref<128x128xf32, #tpu.memory_space<vmem>>, vector<128x128xf32>
    %59 = arith.addf %58, %57 : vector<128x128xf32>
    %c0_79 = arith.constant 0 : index
    %c0_80 = arith.constant 0 : index
    %60 = vector.load %arg7[%c0_79, %c0_80] : memref<128x128xf32, #tpu.memory_space<vmem>>, vector<128x128xf32>
    tpu.vector_store %arg7[%c0_79, %c0_80], %59 {strides = array<i32>} : memref<128x128xf32, #tpu.memory_space<vmem>>, vector<128x128xf32>,
    %c0_81 = arith.constant 0 : index
    %c0_82 = arith.constant 0 : index
    %c2_83 = arith.constant 2 : index
    %c1_84 = arith.constant 1 : index
    %c0_85 = arith.constant 0 : index
    %61 = vector.load %arg3[%c0_81, %c0_82, %c2_83, %c1_84, %c0_85] : memref<1x1x10x18x128xf32, #tpu.memory_space<vmem>>, vector<1x1x8x16x128xf32>
    %62 = vector.shape_cast %61 : vector<1x1x8x16x128xf32> to vector<8x16x128xf32>
    %63 = vector.shape_cast %62 : vector<8x16x128xf32> to vector<128x128xf32>
    %c7 = arith.constant 7 : index
    %c0_86 = arith.constant 0 : index
    %c0_87 = arith.constant 0 : index
    %64 = vector.load %arg4[%c7, %c0_86, %c0_87] : memref<9x128x128xf32, #tpu.memory_space<vmem>>, vector<1x128x128xf32>
    %65 = vector.shape_cast %64 : vector<1x128x128xf32> to vector<128x128xf32>
    %cst_88 = arith.constant dense<0.000000e+00> : vector<128x128xf32>
    %66 = tpu.matmul %63, %65, %cst_88 {dimension_numbers = #tpu.dot_dimension_numbers<[1], [0], [0], [1], [0, 0, 1, 1], [], []>} : vector<128x128xf32>, vector<128x128xf32>, vector<128x128xf32> -> vector<128x128xf32>
    %c0_89 = arith.constant 0 : index
    %c0_90 = arith.constant 0 : index
    %67 = vector.load %arg7[%c0_89, %c0_90] : memref<128x128xf32, #tpu.memory_space<vmem>>, vector<128x128xf32>
    %68 = arith.addf %67, %66 : vector<128x128xf32>
    %c0_91 = arith.constant 0 : index
    %c0_92 = arith.constant 0 : index
    %69 = vector.load %arg7[%c0_91, %c0_92] : memref<128x128xf32, #tpu.memory_space<vmem>>, vector<128x128xf32>
    tpu.vector_store %arg7[%c0_91, %c0_92], %68 {strides = array<i32>} : memref<128x128xf32, #tpu.memory_space<vmem>>, vector<128x128xf32>,
    %c0_93 = arith.constant 0 : index
    %c0_94 = arith.constant 0 : index
    %c2_95 = arith.constant 2 : index
    %c2_96 = arith.constant 2 : index
    %c0_97 = arith.constant 0 : index
    %70 = vector.load %arg3[%c0_93, %c0_94, %c2_95, %c2_96, %c0_97] : memref<1x1x10x18x128xf32, #tpu.memory_space<vmem>>, vector<1x1x8x16x128xf32>
    %71 = vector.shape_cast %70 : vector<1x1x8x16x128xf32> to vector<8x16x128xf32>
    %72 = vector.shape_cast %71 : vector<8x16x128xf32> to vector<128x128xf32>
    %c8 = arith.constant 8 : index
    %c0_98 = arith.constant 0 : index
    %c0_99 = arith.constant 0 : index
    %73 = vector.load %arg4[%c8, %c0_98, %c0_99] : memref<9x128x128xf32, #tpu.memory_space<vmem>>, vector<1x128x128xf32>
    %74 = vector.shape_cast %73 : vector<1x128x128xf32> to vector<128x128xf32>
    %cst_100 = arith.constant dense<0.000000e+00> : vector<128x128xf32>
    %75 = tpu.matmul %72, %74, %cst_100 {dimension_numbers = #tpu.dot_dimension_numbers<[1], [0], [0], [1], [0, 0, 1, 1], [], []>} : vector<128x128xf32>, vector<128x128xf32>, vector<128x128xf32> -> vector<128x128xf32>
    %c0_101 = arith.constant 0 : index
    %c0_102 = arith.constant 0 : index
    %76 = vector.load %arg7[%c0_101, %c0_102] : memref<128x128xf32, #tpu.memory_space<vmem>>, vector<128x128xf32>
    %77 = arith.addf %76, %75 : vector<128x128xf32>
    %c0_103 = arith.constant 0 : index
    %c0_104 = arith.constant 0 : index
    %78 = vector.load %arg7[%c0_103, %c0_104] : memref<128x128xf32, #tpu.memory_space<vmem>>, vector<128x128xf32>
    tpu.vector_store %arg7[%c0_103, %c0_104], %77 {strides = array<i32>} : memref<128x128xf32, #tpu.memory_space<vmem>>, vector<128x128xf32>,
    %c0_105 = arith.constant 0 : index
    %c0_106 = arith.constant 0 : index
    %79 = vector.load %arg7[%c0_105, %c0_106] : memref<128x128xf32, #tpu.memory_space<vmem>>, vector<128x128xf32>
    %c0_107 = arith.constant 0 : index
    %c0_108 = arith.constant 0 : index
    %80 = vector.load %arg5[%c0_107, %c0_108] : memref<1x128xf32, #tpu.memory_space<vmem>>, vector<1x128xf32>
    %81 = vector.shape_cast %80 : vector<1x128xf32> to vector<128xf32>
    %82 = vector.shape_cast %81 : vector<128xf32> to vector<1x128xf32>
    %83 = vector.broadcast %82 : vector<1x128xf32> to vector<128x128xf32>
    %84 = arith.addf %79, %83 : vector<128x128xf32>
    %85 = vector.shape_cast %84 : vector<128x128xf32> to vector<8x16x128xf32>
    %c0_109 = arith.constant 0 : index
    %c0_110 = arith.constant 0 : index
    %c0_111 = arith.constant 0 : index
    %c0_112 = arith.constant 0 : index
    %86 = vector.load %arg6[%c0_109, %c0_110, %c0_111, %c0_112] : memref<1x8x16x128xf32, #tpu.memory_space<vmem>>, vector<1x8x16x128xf32>
    %87 = vector.shape_cast %86 : vector<1x8x16x128xf32> to vector<8x16x128xf32>
    %88 = vector.shape_cast %85 : vector<8x16x128xf32> to vector<1x8x16x128xf32>
    tpu.vector_store %arg6[%c0_109, %c0_110, %c0_111, %c0_112], %88 {strides = array<i32>} : memref<1x8x16x128xf32, #tpu.memory_space<vmem>>, vector<1x8x16x128xf32>,
    return
  }
  func.func @transform_0(%arg0: i32, %arg1: i32, %arg2: i32) -> (i32, i32, i32, i32, i32) {
    %c0_i32 = arith.constant 0 : i32
    %c0_i32_0 = arith.constant 0 : i32
    %c0_i32_1 = arith.constant 0 : i32
    %c0_i32_2 = arith.constant 0 : i32
    return %arg0, %arg1, %c0_i32, %c0_i32_0, %c0_i32_1 : i32, i32, i32, i32, i32
  }
  func.func @transform_1(%arg0: i32, %arg1: i32, %arg2: i32) -> (i32, i32, i32) {
    %c0_i32 = arith.constant 0 : i32
    %c0_i32_0 = arith.constant 0 : i32
    %c0_i32_1 = arith.constant 0 : i32
    return %c0_i32, %c0_i32_0, %arg2 : i32, i32, i32
  }
  func.func @transform_2(%arg0: i32, %arg1: i32, %arg2: i32) -> (i32, i32) {
    %c0_i32 = arith.constant 0 : i32
    %c0_i32_0 = arith.constant 0 : i32
    return %c0_i32, %arg2 : i32, i32
  }
  func.func @transform_3(%arg0: i32, %arg1: i32, %arg2: i32) -> (i32, i32, i32, i32) {
    %c0_i32 = arith.constant 0 : i32
    %c0_i32_0 = arith.constant 0 : i32
    return %arg0, %arg1, %c0_i32, %arg2 : i32, i32, i32, i32
  }
}

</mosaic_0001>

<bundles_post_ra>
// kernel: tpu_custom_call.1
= control target key start
LH: loop header
LB: loop body
LE: loop exit
PB: predicated region body
PF: predicated region fallthrough
CT: control target
= control target key end

     0   :  { %8 = vsyncpa [#allocation4], 0  ;;  %s5010_s0 = inlined_call_operand.vmem [shape: f32[2,2,10,18,128], index: 0, kind: input, shape index: {}]   ;;  %s5011_s1 = inlined_call_operand.vmem [shape: f32[9,128,128], index: 1, kind: input, shape index: {}]   ;;  %s5012_s2 = inlined_call_operand.vmem [shape: f32[1,128], index: 2, kind: input, shape index: {}]   ;;  %s5013_s3 = inlined_call_operand.hbm [shape: f32[2,16,16,128], index: 3, kind: output, shape index: {}]  }
   0x1   :  { %10 = vsyncpa [#allocation4 + $0x1], 0  ;;  %s4090_s12 = smov 0   ;;  %s4092_s13 = smov 0  }
   0x2   :  { %s4094_s14 = smov 0   ;;  %s4096_s15 = smov 0  }
   0x3   :  { %s4098_s16 = smov 0   ;;  %s4100_s17 = smov 0  }
   0x4   :  { %s4102_s18 = smov 0   ;;  %s4104_s19 = smov 0  }
   0x5 LB: > { %s2430_s20 = sadd.s32 4294967295, %s4065_s19   ;;  %s2431_s21 = sadd.s32 4294967294, %s4065_s19   ;;  %s4065_s19 = sphi %s4104_s19, %s16_s19   ;;  %s4061_s18 = sphi %s4102_s18, %s5022_s18   ;;  %s4057_s17 = sphi %s4100_s17, %s5021_s17   ;;  %s4053_s16 = sphi %s4098_s16, %s5020_s16   ;;  %s4049_s15 = sphi %s4096_s15, %s5019_s15   ;;  %s4045_s14 = sphi %s4094_s14, %s5018_s14   ;;  %s4041_s13 = sphi %s4092_s13, %s5017_s13   ;;  %s4037_s12 = sphi %s4090_s12, %s5016_s12  }
   0x6   : > { %s31_s22 = sadd.s32 1, %s4057_s17  ;;  %s35_s23 = sadd.s32 1, %s4061_s18 }
   0x7   : > { %p33_p0 = scmp.ge.s32.totalorder %s31_s22, 2  ;;  %p136_p1 = scmp.ne.s32.totalorder %s4045_s14, %s4041_s13 }
   0x8   : > { %p137_p2 = scmp.eq.s32.totalorder %s2430_s20, 3  ;;  %p142_p5 = scmp.ne.s32.totalorder %s4041_s13, %s4037_s12 }
   0x9   : > { %s5024_s22 = smov (%p33_p0, %s31_s22), 0  ;;  %s5026_s23 = smov (!%p33_p0, %s35_s23), %s4061_s18 }
   0xa   : > { %s120_s24 = ssub.s32 %s4057_s17, %s5024_s22  ;;  %p4141_p3 = por %p137_p2, %p136_p1 }
   0xb   : > { %p37_p4 = scmp.ge.s32.totalorder %s5026_s23, 2  ;;  %p143_p6 = scmp.eq.s32.totalorder %s2431_s21, 3 }
   0xc   : > { %p2436_p7 = scmp.ge.s32.totalorder %s4065_s19, 1  ;;  %p186_p9 = scmp.lt.s32.totalorder %s4065_s19, 5 }
   0xd   : > { %s5028_s23 = smov (%p37_p4, %s5026_s23), 0  ;;  %p4150_p8 = por %p143_p6, %p142_p5 }
   0xe   : > { %s119_s27 = ssub.s32 %s4061_s18, %s5028_s23  ;;  %s126_s28 = sadd.s32 1, %s4045_s14 }
   0xf   : > { %s121_s29 = sor.u32 %s120_s24, %s119_s27  ;;  %p187_p10 = pnand %p2436_p7, %p186_p9 }
  0x10   : > { %p124_p11 = scmp.eq.s32.totalorder %s121_s29, 0  ;;  %v254_v0 = vld [vmem:[%s5011_s1] sm:$0xff] (!%p187_p10)  ;;  %v255_v1 = vld [vmem:[%s5011_s1 + $0x8] sm:$0xff] (!%p187_p10)  ;;  %p221_p12 = scmp.lt.s32.totalorder (!%p187_p10), %s4053_s16, 1  ;;  %v256_v5 = vld [vmem:[%s5011_s1 + $0x10] sm:$0xff] (!%p187_p10) }
  0x11   : > { %190 = sbr.rel (%p187_p10) target bundleno = 425 (0x1a9), region = 32  ;;  %v2519_v2 = vld [vmem:[%s5011_s1 + $0x200] sm:$0xff] (!%p187_p10)  ;;  %p223_p13 = scmp.lt.s32.totalorder (!%p187_p10), %s4049_s15, 1  ;;  %v3464_v3 = vpack.c.bf16 (!%p187_p10), %v255_v1, %v254_v0  ;;  %v2520_v4 = vld [vmem:[%s5011_s1 + $0x208] sm:$0xff] (!%p187_p10)  ;;  %v257_v6 = vld [vmem:[%s5011_s1 + $0x18] sm:$0xff] (!%p187_p10) }
  0x12   : > { %s4159_s30 = scalar_select %p124_p11, %s4045_s14, %s126_s28  }
  0x13   : > { %v3592_v7 = vpack.c.bf16 (!%p187_p10), %v2520_v4, %v2519_v2  ;;  %v3468_v8 = vpack.c.bf16 (!%p187_p10), %v257_v6, %v256_v5  ;;  %v2521_v9 = vld [vmem:[%s5011_s1 + $0x210] sm:$0xff] (!%p187_p10)  ;;  %v2522_v10 = vld [vmem:[%s5011_s1 + $0x218] sm:$0xff] (!%p187_p10)  ;;  %v258_v11 = vld [vmem:[%s5011_s1 + $0x20] sm:$0xff] (!%p187_p10)  ;;  %3465 = vmatprep.subr.bf16.mxu1 (!%p187_p10), %v3464_v3  ;;  %s2671_s5 = sshll.u32 (!%p187_p10), %s4049_s15, 4  ;;  %s2667_s6 = sshll.u32 (!%p187_p10), %s4053_s16, 5 }
  0x14   : > { %v3596_v12 = vpack.c.bf16 (!%p187_p10), %v2522_v10, %v2521_v9  ;;  %v259_v13 = vld [vmem:[%s5011_s1 + $0x28] sm:$0xff] (!%p187_p10)  ;;  %v2523_v14 = vld [vmem:[%s5011_s1 + $0x220] sm:$0xff] (!%p187_p10)  ;;  %3467 = vmatpush3.bf16.msra.mxu1 (!%p187_p10), %v3464_v3  ;;  %v260_v18 = vld [vmem:[%s5011_s1 + $0x30] sm:$0xff] (!%p187_p10) }
  0x15   : > { %v2524_v15 = vld [vmem:[%s5011_s1 + $0x228] sm:$0xff] (!%p187_p10)  ;;  %3593 = vmatprep.subr.bf16.mxu0 (!%p187_p10), %v3592_v7  ;;  %3469 = vmatprep.subr.bf16.mxu1 (!%p187_p10), %v3468_v8  ;;  %v3472_v16 = vpack.c.bf16 (!%p187_p10), %v259_v13, %v258_v11  ;;  %v261_v19 = vld [vmem:[%s5011_s1 + $0x38] sm:$0xff] (!%p187_p10)  ;;  %v2525_v20 = vld [vmem:[%s5011_s1 + $0x230] sm:$0xff] (!%p187_p10) }
  0x16   : > { %3595 = vmatpush3.bf16.msra.mxu0 (!%p187_p10), %v3592_v7  ;;  %v3600_v17 = vpack.c.bf16 (!%p187_p10), %v2524_v15, %v2523_v14  ;;  %v2526_v21 = vld [vmem:[%s5011_s1 + $0x238] sm:$0xff] (!%p187_p10)  ;;  %v3476_v22 = vpack.c.bf16 (!%p187_p10), %v261_v19, %v260_v18  ;;  %v262_v24 = vld [vmem:[%s5011_s1 + $0x40] sm:$0xff] (!%p187_p10)  ;;  %v263_v25 = vld [vmem:[%s5011_s1 + $0x48] sm:$0xff] (!%p187_p10) }
  0x17   : > { %3597 = vmatprep.subr.bf16.mxu0 (!%p187_p10), %v3596_v12  ;;  %v3604_v23 = vpack.c.bf16 (!%p187_p10), %v2526_v21, %v2525_v20  ;;  %v2527_v27 = vld [vmem:[%s5011_s1 + $0x240] sm:$0xff] (!%p187_p10)  ;;  %v2528_v28 = vld [vmem:[%s5011_s1 + $0x248] sm:$0xff] (!%p187_p10)  ;;  %v3480_v30 = vpack.c.bf16 (!%p187_p10), %v263_v25, %v262_v24  ;;  %v264_v32 = vld [vmem:[%s5011_s1 + $0x50] sm:$0xff] (!%p187_p10) }
  0x18   : > { %s222_s8 = scalar_select %p221_p12, %s4053_s16, 1  ;;  %3471 = vmatpush3.bf16.msra.mxu1 %v3468_v8  ;;  %v3608_v31 = vpack.c.bf16 %v2528_v28, %v2527_v27  ;;  %v265_v33 = vld [vmem:[%s5011_s1 + $0x58] sm:$0xff]  ;;  %v2529_v34 = vld [vmem:[%s5011_s1 + $0x250] sm:$0xff]  ;;  %v266_v38 = vld [vmem:[%s5011_s1 + $0x60] sm:$0xff] }
  0x19   : > { %s224_s27 = scalar_select %p223_p13, %s4049_s15, 1  ;;  %3473 = vmatprep.subr.bf16.mxu1 %v3472_v16  ;;  %v2530_v35 = vld [vmem:[%s5011_s1 + $0x258] sm:$0xff]  ;;  %v3484_v36 = vpack.c.bf16 %v265_v33, %v264_v32  ;;  %v267_v39 = vld [vmem:[%s5011_s1 + $0x68] sm:$0xff]  ;;  %v2531_v40 = vld [vmem:[%s5011_s1 + $0x260] sm:$0xff] }
  0x1a   : > { %s3897_s28 = smul.u32 60, %s222_s8  ;;  %3599 = vmatpush3.bf16.msra.mxu0 %v3596_v12  ;;  %v3612_v37 = vpack.c.bf16 %v2530_v35, %v2529_v34  ;;  %v2532_v41 = vld [vmem:[%s5011_s1 + $0x268] sm:$0xff]  ;;  %v3488_v42 = vpack.c.bf16 %v267_v39, %v266_v38  ;;  %v268_v44 = vld [vmem:[%s5011_s1 + $0x70] sm:$0xff]  ;;  %v269_v45 = vld [vmem:[%s5011_s1 + $0x78] sm:$0xff]  ;;  %s2311_s15 = sadd.s32 %s2671_s5, %s2667_s6 }
  0x1b   : > { %s3896_s29 = smul.u32 30, %s224_s27  ;;  %3601 = vmatprep.subr.bf16.mxu0 %v3600_v17  ;;  %v3616_v43 = vpack.c.bf16 %v2532_v41, %v2531_v40  ;;  %v2533_v46 = vld [vmem:[%s5011_s1 + $0x270] sm:$0xff]  ;;  %v2534_v47 = vld [vmem:[%s5011_s1 + $0x278] sm:$0xff]  ;;  %v3492_v48 = vpack.c.bf16 %v269_v45, %v268_v44  ;;  %v2439_v50 = vld [vmem:[%s5011_s1 + $0x80] sm:$0xff]  ;;  %s2668_s16 = sshll.u32 %s2311_s15, 7 }
  0x1c   : > { %3475 = vmatpush3.bf16.msra.mxu1 %v3472_v16  ;;  %v3620_v49 = vpack.c.bf16 %v2534_v47, %v2533_v46  ;;  %v2440_v51 = vld [vmem:[%s5011_s1 + $0x88] sm:$0xff]  ;;  %v2551_v52 = vld [vmem:[%s5011_s1 + $0x280] sm:$0xff]  ;;  %v2441_v56 = vld [vmem:[%s5011_s1 + $0x90] sm:$0xff]  ;;  %s4947_s9 = scalar_lea.hbm %s5013_s3, %s2668_s16  ;;  %s4067_s8 = smov [#allocation3]  }
  0x1d   : > { %s227_s20 = sadd.s32 %s3897_s28, %s3896_s29  ;;  %3477 = vmatprep.subr.bf16.mxu1 %v3476_v22  ;;  %v2552_v53 = vld [vmem:[%s5011_s1 + $0x288] sm:$0xff]  ;;  %v3496_v54 = vpack.c.bf16 %v2440_v51, %v2439_v50  ;;  %v2442_v57 = vld [vmem:[%s5011_s1 + $0x98] sm:$0xff]  ;;  %v2553_v59 = vld [vmem:[%s5011_s1 + $0x290] sm:$0xff] }
  0x1e   : > { %s2438_s21 = sshll.u32 %s227_s20, 3  ;;  %3603 = vmatpush3.bf16.msra.mxu0 %v3600_v17  ;;  %v3624_v55 = vpack.c.bf16 %v2552_v53, %v2551_v52  ;;  %v2554_v60 = vld [vmem:[%s5011_s1 + $0x298] sm:$0xff]  ;;  %v3500_v63 = vpack.c.bf16 %v2442_v57, %v2441_v56  ;;  %v2443_v2 = vld [vmem:[%s5011_s1 + $0xa0] sm:$0xff]  ;;  %v2444_v3 = vld [vmem:[%s5011_s1 + $0xa8] sm:$0xff] }
  0x1f   : > { %s4218_s4 = scalar_lea.vmem %s5010_s0, %s2438_s21  ;;  %3605 = vmatprep.subr.bf16.mxu0 %v3604_v23  ;;  %v3628_v1 = vpack.c.bf16 %v2554_v60, %v2553_v59  ;;  %v2555_v5 = vld [vmem:[%s5011_s1 + $0x2a0] sm:$0xff]  ;;  %v2556_v6 = vld [vmem:[%s5011_s1 + $0x2a8] sm:$0xff]  ;;  %v3504_v9 = vpack.c.bf16 %v2444_v3, %v2443_v2  ;;  %v2445_v12 = vld [vmem:[%s5011_s1 + $0xb0] sm:$0xff] }
  0x20   : > { %v238_v26 = vld [vmem:[%s4218_s4] sm:$0xff]  ;;  %3479 = vmatpush3.bf16.msra.mxu1 %v3476_v22  ;;  %v239_v58 = vld [vmem:[%s4218_s4 + $0x8] sm:$0xff]  ;;  %v4302_v62 = vld [vmem:[%s4218_s4 + $0x18] sm:$0xff]  ;;  %v3632_v11 = vpack.c.bf16 %v2556_v6, %v2555_v5 }
  0x21   : > { %2992 = vmatprep.mubr.f32.mxu1 %v238_v26  ;;  %v4234_v29 = vld [vmem:[%s4218_s4 + $0x19] sm:$0xff]  ;;  %3481 = vmatprep.subr.bf16.mxu1 %v3480_v30  ;;  %v4299_v61 = vld [vmem:[%s4218_s4 + $0x21] sm:$0xff]  ;;  %v4305_v0 = vld [vmem:[%s4218_s4 + $0x31] sm:$0xff] }
  0x22   : > { %3216 = vmatprep.mubr.f32.mxu0 %v4234_v29  ;;  %3607 = vmatpush3.bf16.msra.mxu0 %v3604_v23  ;;  %v4315_v4 = vld [vmem:[%s4218_s4 + $0x20] sm:$0xff]  ;;  %v4329_v8 = vld [vmem:[%s4218_s4 + $0x30] sm:$0xff]  ;;  %v2446_v13 = vld [vmem:[%s5011_s1 + $0xb8] sm:$0xff] }
  0x23   : > { %3609 = vmatprep.subr.bf16.mxu0 %v3608_v31  ;;  %v4325_v7 = vld [vmem:[%s4218_s4 + $0x39] sm:$0xff]  ;;  %v4333_v10 = vld [vmem:[%s4218_s4 + $0x49] sm:$0xff]  ;;  %v4353_v17 = vld [vmem:[%s4218_s4 + $0x51] sm:$0xff]  ;;  %v3508_v19 = vpack.c.bf16 %v2446_v13, %v2445_v12 }
  0x24   : > { %3483 = vmatpush3.bf16.msra.mxu1 %v3480_v30  ;;  %v4343_v14 = vld [vmem:[%s4218_s4 + $0x38] sm:$0xff]  ;;  %v2557_v15 = vld [vmem:[%s5011_s1 + $0x2b0] sm:$0xff]  ;;  %v4357_v18 = vld [vmem:[%s4218_s4 + $0x48] sm:$0xff] }
  0x25   : > { %3485 = vmatprep.subr.bf16.mxu1 %v3484_v36  ;;  %v2558_v16 = vld [vmem:[%s5011_s1 + $0x2b8] sm:$0xff]  ;;  %v4361_v20 = vld [vmem:[%s4218_s4 + $0x61] sm:$0xff]  ;;  %v4371_v24 = vld [vmem:[%s4218_s4 + $0x50] sm:$0xff] }
  0x26   : > { %3611 = vmatpush3.bf16.msra.mxu0 %v3608_v31  ;;  %v3636_v21 = vpack.c.bf16 %v2558_v16, %v2557_v15  ;;  %v2447_v22 = vld [vmem:[%s5011_s1 + $0xc0] sm:$0xff]  ;;  %v2448_v23 = vld [vmem:[%s5011_s1 + $0xc8] sm:$0xff]  ;;  %v2449_v33 = vld [vmem:[%s5011_s1 + $0xd0] sm:$0xff] }
  0x27   : > { %3613 = vmatprep.subr.bf16.mxu0 %v3612_v37  ;;  %v2559_v25 = vld [vmem:[%s5011_s1 + $0x2c0] sm:$0xff]  ;;  %v2560_v26 = vld [vmem:[%s5011_s1 + $0x2c8] sm:$0xff]  ;;  %v3512_v30 = vpack.c.bf16 %v2448_v23, %v2447_v22  ;;  %v2450_v34 = vld [vmem:[%s5011_s1 + $0xd8] sm:$0xff] }
  0x28   : > { %3487 = vmatpush3.bf16.msra.mxu1 %v3484_v36  ;;  %v4381_v27 = vld [vmem:[%s4218_s4 + $0x69] sm:$0xff]  ;;  %v4385_v28 = vld [vmem:[%s4218_s4 + $0x60] sm:$0xff]  ;;  %v3640_v32 = vpack.c.bf16 %v2560_v26, %v2559_v25  ;;  %v4413_v39 = vld [vmem:[%s4218_s4 + $0x78] sm:$0xff]  ;;  %v3516_v40 = vpack.c.bf16 %v2450_v34, %v2449_v33 }
  0x29   : > { %3489 = vmatprep.subr.bf16.mxu1 %v3488_v42  ;;  %v4389_v31 = vld [vmem:[%s4218_s4 + $0x79] sm:$0xff]  ;;  %v4399_v35 = vld [vmem:[%s4218_s4 + $0x68] sm:$0xff]  ;;  %v2561_v36 = vld [vmem:[%s5011_s1 + $0x2d0] sm:$0xff] }
  0x2a   : > { %3615 = vmatpush3.bf16.msra.mxu0 %v3612_v37  ;;  %v2562_v37 = vld [vmem:[%s5011_s1 + $0x2d8] sm:$0xff]  ;;  %v4409_v38 = vld [vmem:[%s4218_s4 + $0x81] sm:$0xff]  ;;  %v4445_v51 = vld [vmem:[%s4218_s4 + $0xa9] sm:$0xff] }
  0x2b   : > { %3617 = vmatprep.subr.bf16.mxu0 %v3616_v43  ;;  %v4417_v41 = vld [vmem:[%s4218_s4 + $0x91] sm:$0xff]  ;;  %v2452_v44 = vld [vmem:[%s5011_s1 + $0xe8] sm:$0xff]  ;;  %v4427_v45 = vld [vmem:[%s4218_s4 + $0x80] sm:$0xff] }
  0x2c   : > { %3491 = vmatpush3.bf16.msra.mxu1 %v3488_v42  ;;  %v3644_v42 = vpack.c.bf16 %v2562_v37, %v2561_v36  ;;  %v2563_v46 = vld [vmem:[%s5011_s1 + $0x2e0] sm:$0xff]  ;;  %v2564_v47 = vld [vmem:[%s5011_s1 + $0x2e8] sm:$0xff]  ;;  %v2453_v53 = vld [vmem:[%s5011_s1 + $0xf0] sm:$0xff] }
  0x2d   : > { %3493 = vmatprep.subr.bf16.mxu1 %v3492_v48  ;;  %v3648_v52 = vpack.c.bf16 %v2564_v47, %v2563_v46  ;;  %v2565_v56 = vld [vmem:[%s5011_s1 + $0x2f0] sm:$0xff]  ;;  %v2566_v57 = vld [vmem:[%s5011_s1 + $0x2f8] sm:$0xff]  ;;  %v4469_v59 = vld [vmem:[%s4218_s4 + $0xa8] sm:$0xff] }
  0x2e   : > { %3619 = vmatpush3.bf16.msra.mxu0 %v3616_v43  ;;  %v2451_v43 = vld [vmem:[%s5011_s1 + $0xe0] sm:$0xff]  ;;  %v2456_v3 = vld [vmem:[%s5011_s1 + $0x108] sm:$0xff]  ;;  %v4483_v5 = vld [vmem:[%s4218_s4 + $0xb0] sm:$0xff] }
  0x2f   : > { %3621 = vmatprep.subr.bf16.mxu0 %v3620_v49  ;;  %v3520_v50 = vpack.c.bf16 %v2452_v44, %v2451_v43  ;;  %v2455_v2 = vld [vmem:[%s5011_s1 + $0x100] sm:$0xff]  ;;  %v432_v22 = vld [vmem:[%s4218_s4 + $0x9] sm:$0xff]  ;;  %v2586_v25 = vld [vmem:[%s5011_s1 + $0x318] sm:$0xff] }
  0x30   : > { %3495 = vmatpush3.bf16.msra.mxu1 %v3492_v48  ;;  %v4437_v48 = vld [vmem:[%s4218_s4 + $0x99] sm:$0xff]  ;;  %v431_v12 = vld [vmem:[%s4218_s4 + $0x1] sm:$0xff]  ;;  %v3528_v13 = vpack.c.bf16 %v2456_v3, %v2455_v2  ;;  %v2585_v23 = vld [vmem:[%s5011_s1 + $0x310] sm:$0xff] }
  0x31   : > { %3497 = vmatprep.subr.bf16.mxu1 %v3496_v54  ;;  %v2583_v6 = vld [vmem:[%s5011_s1 + $0x300] sm:$0xff]  ;;  %v3660_v33 = vpack.c.bf16 %v2586_v25, %v2585_v23  ;;  %v2460_v36 = vld [vmem:[%s5011_s1 + $0x128] sm:$0xff]  ;;  %v2461_v47 = vld [vmem:[%s5011_s1 + $0x130] sm:$0xff] }
  0x32   : > { %3623 = vmatpush3.bf16.msra.mxu0 %v3620_v49  ;;  %v4441_v49 = vld [vmem:[%s4218_s4 + $0x90] sm:$0xff]  ;;  %v4499_v15 = vld [vmem:[%s4218_s4 + $0x1a] sm:$0xff]  ;;  %v4516_v26 = vld [vmem:[%s4218_s4 + $0x22] sm:$0xff] }
  0x33   : > { %3625 = vmatprep.subr.bf16.mxu0 %v3624_v55  ;;  %2993 = vmatmul.mubr.f32.vlgmr.msra.gmra.mrb[0].mxu1 %v239_v58  ;;  %v4465_v58 = vld [vmem:[%s4218_s4 + $0xb1] sm:$0xff]  ;;  %v2459_v34 = vld [vmem:[%s5011_s1 + $0x120] sm:$0xff]  ;;  %v2592_v2 = vld [vmem:[%s5011_s1 + $0x348] sm:$0xff] }
  0x34   : > { %3499 = vmatpush3.bf16.msra.mxu1 %v3496_v54  ;;  %2995 = vmatprep.mubr.f32.mxu1 %v4302_v62  ;;  %v2454_v54 = vld [vmem:[%s5011_s1 + $0xf8] sm:$0xff]  ;;  %v2587_v37 = vld [vmem:[%s5011_s1 + $0x320] sm:$0xff]  ;;  %v3536_v43 = vpack.c.bf16 %v2460_v36, %v2459_v34  ;;  %v4542_v44 = vld [vmem:[%s4218_s4 + $0x4a] sm:$0xff] }
  0x35   : > { %3217 = vmatmul.mubr.f32.vlgmr.msra.gmra.mrb[0].mxu0 %v4299_v61  ;;  %3501 = vmatprep.subr.bf16.mxu1 %v3500_v63  ;;  %v3524_v60 = vpack.c.bf16 %v2454_v54, %v2453_v53  ;;  %v4564_v54 = vld [vmem:[%s4218_s4 + $0x62] sm:$0xff]  ;;  %v4581_v3 = vld [vmem:[%s4218_s4 + $0x6a] sm:$0xff]  ;;  %v4608_v25 = vld [vmem:[%s4218_s4 + $0x92] sm:$0xff] }
  0x36   : > { %3627 = vmatpush3.bf16.msra.mxu0 %v3624_v55  ;;  %3219 = vmatprep.mubr.f32.mxu0 %v4305_v0  ;;  %v4455_v55 = vld [vmem:[%s4218_s4 + $0x98] sm:$0xff]  ;;  %v2468_v34 = vld [vmem:[%s5011_s1 + $0x168] sm:$0xff]  ;;  %v2595_v36 = vld [vmem:[%s5011_s1 + $0x360] sm:$0xff] }
  0x37   : > { %2996 = vmatmul.mubr.f32.gmra.mrb[2].mxu1 %v4315_v4  ;;  %3629 = vmatprep.subr.bf16.mxu0 %v3628_v1 }
  0x38   : > { %3503 = vmatpush3.bf16.msra.mxu1 %v3500_v63  ;;  %2998 = vmatprep.mubr.f32.mxu1 %v4329_v8  ;;  %v4473_v63 = vld [vmem:[%s4218_s4 + $0xc1] sm:$0xff] }
  0x39   : > { %3220 = vmatmul.mubr.f32.gmra.mrb[2].mxu0 %v4325_v7  ;;  %3505 = vmatprep.subr.bf16.mxu1 %v3504_v9 }
  0x3a   : > { %3631 = vmatpush3.bf16.msra.mxu0 %v3628_v1  ;;  %3222 = vmatprep.mubr.f32.mxu0 %v4333_v10  ;;  %v3652_v1 = vpack.c.bf16 %v2566_v57, %v2565_v56  ;;  %v2463_v57 = vld [vmem:[%s5011_s1 + $0x140] sm:$0xff] }
  0x3b   : > { %2999 = vmatmul.mubr.f32.gmra.mrb[4].mxu1 %v4343_v14  ;;  %3633 = vmatprep.subr.bf16.mxu0 %v3632_v11 }
  0x3c   : > { %3507 = vmatpush3.bf16.msra.mxu1 %v3504_v9  ;;  %3001 = vmatprep.mubr.f32.mxu1 %v4357_v18  ;;  %v2584_v9 = vld [vmem:[%s5011_s1 + $0x308] sm:$0xff] }
  0x3d   : > { %3223 = vmatmul.mubr.f32.gmra.mrb[4].mxu0 %v4353_v17  ;;  %3509 = vmatprep.subr.bf16.mxu1 %v3508_v19  ;;  %v3656_v16 = vpack.c.bf16 %v2584_v9, %v2583_v6  ;;  %v4586_v9 = vld [vmem:[%s4218_s4 + $0x7a] sm:$0xff] }
  0x3e   : > { %3635 = vmatpush3.bf16.msra.mxu0 %v3632_v11  ;;  %3225 = vmatprep.mubr.f32.mxu0 %v4361_v20  ;;  %v4493_v11 = vld [vmem:[%s4218_s4 + $0xc9] sm:$0xff] }
  0x3f   : > { %3002 = vmatmul.mubr.f32.gmra.mrb[6].mxu1 %v4371_v24  ;;  %3637 = vmatprep.subr.bf16.mxu0 %v3636_v21 }
  0x40   : > { %3511 = vmatpush3.bf16.msra.mxu1 %v3508_v19  ;;  %3004 = vmatprep.mubr.f32.mxu1 %v4385_v28  ;;  %v2457_v19 = vld [vmem:[%s5011_s1 + $0x110] sm:$0xff] }
  0x41   : > { %3226 = vmatmul.mubr.f32.gmra.mrb[6].mxu0 %v4381_v27  ;;  %3513 = vmatprep.subr.bf16.mxu1 %v3512_v30 }
  0x42   : > { %3639 = vmatpush3.bf16.msra.mxu0 %v3636_v21  ;;  %3228 = vmatprep.mubr.f32.mxu0 %v4389_v31  ;;  %v2458_v21 = vld [vmem:[%s5011_s1 + $0x118] sm:$0xff] }
  0x43   : > { %3005 = vmatmul.mubr.f32.gmra.mrb[8].mxu1 %v4399_v35  ;;  %3641 = vmatprep.subr.bf16.mxu0 %v3640_v32 }
  0x44   : > { %3515 = vmatpush3.bf16.msra.mxu1 %v3512_v30  ;;  %3007 = vmatprep.mubr.f32.mxu1 %v4413_v39  ;;  %v3532_v30 = vpack.c.bf16 %v2458_v21, %v2457_v19  ;;  %v2593_v19 = vld [vmem:[%s5011_s1 + $0x350] sm:$0xff]  ;;  %v2594_v21 = vld [vmem:[%s5011_s1 + $0x358] sm:$0xff] }
  0x45   : > { %3229 = vmatmul.mubr.f32.gmra.mrb[8].mxu0 %v4409_v38  ;;  %3517 = vmatprep.subr.bf16.mxu1 %v3516_v40 }
  0x46   : > { %3643 = vmatpush3.bf16.msra.mxu0 %v3640_v32  ;;  %3231 = vmatprep.mubr.f32.mxu0 %v4417_v41  ;;  %v4520_v32 = vld [vmem:[%s4218_s4 + $0x32] sm:$0xff] }
  0x47   : > { %3008 = vmatmul.mubr.f32.gmra.mrb[10].mxu1 %v4427_v45  ;;  %3645 = vmatprep.subr.bf16.mxu0 %v3644_v42 }
  0x48   : > { %3519 = vmatpush3.bf16.msra.mxu1 %v3516_v40  ;;  %3010 = vmatprep.mubr.f32.mxu1 %v4441_v49  ;;  %v2588_v40 = vld [vmem:[%s5011_s1 + $0x328] sm:$0xff] }
  0x49   : > { %3232 = vmatmul.mubr.f32.gmra.mrb[10].mxu0 %v4437_v48  ;;  %3521 = vmatprep.subr.bf16.mxu1 %v3520_v50  ;;  %v3664_v46 = vpack.c.bf16 %v2588_v40, %v2587_v37  ;;  %v2596_v37 = vld [vmem:[%s5011_s1 + $0x368] sm:$0xff]  ;;  %v4625_v40 = vld [vmem:[%s4218_s4 + $0x9a] sm:$0xff] }
  0x4a   : > { %3647 = vmatpush3.bf16.msra.mxu0 %v3644_v42  ;;  %3234 = vmatprep.mubr.f32.mxu0 %v4445_v51  ;;  %v4537_v42 = vld [vmem:[%s4218_s4 + $0x3a] sm:$0xff] }
  0x4b   : > { %3011 = vmatmul.mubr.f32.gmra.mrb[12].mxu1 %v4455_v55  ;;  %3649 = vmatprep.subr.bf16.mxu0 %v3648_v52 }
  0x4c   : > { %3523 = vmatpush3.bf16.msra.mxu1 %v3520_v50  ;;  %3013 = vmatprep.mubr.f32.mxu1 %v4469_v59  ;;  %v2590_v50 = vld [vmem:[%s5011_s1 + $0x338] sm:$0xff] }
  0x4d   : > { %3235 = vmatmul.mubr.f32.gmra.mrb[12].mxu0 %v4465_v58  ;;  %3525 = vmatprep.subr.bf16.mxu1 %v3524_v60 }
  0x4e   : > { %3651 = vmatpush3.bf16.msra.mxu0 %v3648_v52  ;;  %3237 = vmatprep.mubr.f32.mxu0 %v4473_v63  ;;  %v4559_v52 = vld [vmem:[%s4218_s4 + $0x52] sm:$0xff] }
  0x4f   : > { %3014 = vmatmul.mubr.f32.gmra.mrb[14].mxu1 %v4483_v5  ;;  %3653 = vmatprep.subr.bf16.mxu0 %v3652_v1 }
  0x50   : > { %3527 = vmatpush3.bf16.msra.mxu1 %v3524_v60  ;;  %3048 = vmatprep.mubr.f32.mxu1 %v431_v12  ;;  %v2464_v60 = vld [vmem:[%s5011_s1 + $0x148] sm:$0xff] }
  0x51   : > { %3238 = vmatmul.mubr.f32.gmra.mrb[14].mxu0 %v4493_v11  ;;  %3529 = vmatprep.subr.bf16.mxu1 %v3528_v13  ;;  %v3544_v6 = vpack.c.bf16 %v2464_v60, %v2463_v57  ;;  %v4652_v60 = vld [vmem:[%s4218_s4 + $0xc2] sm:$0xff] }
  0x52   : > { %3655 = vmatpush3.bf16.msra.mxu0 %v3652_v1  ;;  %3272 = vmatprep.mubr.f32.mxu0 %v4499_v15  ;;  %v2591_v1 = vld [vmem:[%s5011_s1 + $0x340] sm:$0xff] }
  0x53   : > { %3049 = vmatmul.mubr.f32.vlgmr.msra.gmra.mrb[0].mxu1 %v432_v22  ;;  %3657 = vmatprep.subr.bf16.mxu0 %v3656_v16  ;;  %v3672_v12 = vpack.c.bf16 %v2592_v2, %v2591_v1  ;;  %v4603_v22 = vld [vmem:[%s4218_s4 + $0x82] sm:$0xff] }
  0x54   : > { %3531 = vmatpush3.bf16.msra.mxu1 %v3528_v13  ;;  %3051 = vmatprep.mubr.f32.mxu1 %v4234_v29  ;;  %v2462_v29 = vld [vmem:[%s5011_s1 + $0x138] sm:$0xff]  ;;  %v2465_v13 = vld [vmem:[%s5011_s1 + $0x150] sm:$0xff]  ;;  %v2487_v2 = vld [vmem:[%s5011_s1 + $0x180] sm:$0xff] }
  0x55   : > { %3273 = vmatmul.mubr.f32.vlgmr.msra.gmra.mrb[0].mxu0 %v4516_v26  ;;  %3533 = vmatprep.subr.bf16.mxu1 %v3532_v30  ;;  %v3540_v53 = vpack.c.bf16 %v2462_v29, %v2461_v47  ;;  %v3680_v47 = vpack.c.bf16 %v2596_v37, %v2595_v36  ;;  %v2469_v29 = vld [vmem:[%s5011_s1 + $0x170] sm:$0xff]  ;;  %v2618_v37 = vld [vmem:[%s5011_s1 + $0x398] sm:$0xff] }
  0x56   : > { %3659 = vmatpush3.bf16.msra.mxu0 %v3656_v16  ;;  %3275 = vmatprep.mubr.f32.mxu0 %v4520_v32  ;;  %v2466_v16 = vld [vmem:[%s5011_s1 + $0x158] sm:$0xff]  ;;  %v2617_v36 = vld [vmem:[%s5011_s1 + $0x390] sm:$0xff] }
  0x57   : > { %3052 = vmatmul.mubr.f32.gmra.mrb[2].mxu1 %v4299_v61  ;;  %3661 = vmatprep.subr.bf16.mxu0 %v3660_v33  ;;  %v2589_v61 = vld [vmem:[%s5011_s1 + $0x330] sm:$0xff]  ;;  %v3548_v23 = vpack.c.bf16 %v2466_v16, %v2465_v13  ;;  %v2616_v13 = vld [vmem:[%s5011_s1 + $0x388] sm:$0xff] }
  0x58   : > { %3535 = vmatpush3.bf16.msra.mxu1 %v3532_v30  ;;  %3054 = vmatprep.mubr.f32.mxu1 %v4305_v0  ;;  %v3668_v56 = vpack.c.bf16 %v2590_v50, %v2589_v61  ;;  %v3676_v30 = vpack.c.bf16 %v2594_v21, %v2593_v19  ;;  %v2470_v61 = vld [vmem:[%s5011_s1 + $0x178] sm:$0xff]  ;;  %v2597_v50 = vld [vmem:[%s5011_s1 + $0x370] sm:$0xff]  ;;  %v657_v19 = vld [vmem:[%s4218_s4 + $0x2] sm:$0xff] }
  0x59   : > { %3276 = vmatmul.mubr.f32.gmra.mrb[2].mxu0 %v4537_v42  ;;  %3537 = vmatprep.subr.bf16.mxu1 %v3536_v43  ;;  %v3556_v57 = vpack.c.bf16 %v2470_v61, %v2469_v29  ;;  %v4669_v16 = vld [vmem:[%s4218_s4 + $0xca] sm:$0xff]  ;;  %v2491_v29 = vld [vmem:[%s5011_s1 + $0x1a0] sm:$0xff] }
  0x5a   : > { %3663 = vmatpush3.bf16.msra.mxu0 %v3660_v33  ;;  %3278 = vmatprep.mubr.f32.mxu0 %v4542_v44  ;;  %v2467_v33 = vld [vmem:[%s5011_s1 + $0x160] sm:$0xff]  ;;  %v2492_v61 = vld [vmem:[%s5011_s1 + $0x1a8] sm:$0xff] }
  0x5b   : > { %3055 = vmatmul.mubr.f32.gmra.mrb[4].mxu1 %v4325_v7  ;;  %3665 = vmatprep.subr.bf16.mxu0 %v3664_v46 }
  0x5c   : > { %3539 = vmatpush3.bf16.msra.mxu1 %v3536_v43  ;;  %3057 = vmatprep.mubr.f32.mxu1 %v4333_v10  ;;  %v3552_v43 = vpack.c.bf16 %v2468_v34, %v2467_v33  ;;  %v2490_v33 = vld [vmem:[%s5011_s1 + $0x198] sm:$0xff]  ;;  %v658_v34 = vld [vmem:[%s4218_s4 + $0xa] sm:$0xff] }
  0x5d   : > { %3279 = vmatmul.mubr.f32.gmra.mrb[4].mxu0 %v4559_v52  ;;  %3541 = vmatprep.subr.bf16.mxu1 %v3540_v53 }
  0x5e   : > { %3667 = vmatpush3.bf16.msra.mxu0 %v3664_v46  ;;  %3281 = vmatprep.mubr.f32.mxu0 %v4564_v54  ;;  %v4630_v46 = vld [vmem:[%s4218_s4 + $0xaa] sm:$0xff] }
  0x5f   : > { %3058 = vmatmul.mubr.f32.gmra.mrb[6].mxu1 %v4353_v17  ;;  %3669 = vmatprep.subr.bf16.mxu0 %v3668_v56 }
  0x60   : > { %3543 = vmatpush3.bf16.msra.mxu1 %v3540_v53  ;;  %3060 = vmatprep.mubr.f32.mxu1 %v4361_v20  ;;  %v2598_v53 = vld [vmem:[%s5011_s1 + $0x378] sm:$0xff] }
  0x61   : > { %3282 = vmatmul.mubr.f32.gmra.mrb[6].mxu0 %v4581_v3  ;;  %3545 = vmatprep.subr.bf16.mxu1 %v3544_v6  ;;  %v3684_v1 = vpack.c.bf16 %v2598_v53, %v2597_v50  ;;  %v2619_v50 = vld [vmem:[%s5011_s1 + $0x3a0] sm:$0xff]  ;;  %v2620_v53 = vld [vmem:[%s5011_s1 + $0x3a8] sm:$0xff] }
  0x62   : > { %3671 = vmatpush3.bf16.msra.mxu0 %v3668_v56  ;;  %3284 = vmatprep.mubr.f32.mxu0 %v4586_v9  ;;  %v4647_v56 = vld [vmem:[%s4218_s4 + $0xb2] sm:$0xff] }
  0x63   : > { %3061 = vmatmul.mubr.f32.gmra.mrb[8].mxu1 %v4381_v27  ;;  %3673 = vmatprep.subr.bf16.mxu0 %v3672_v12 }
  0x64   : > { %3547 = vmatpush3.bf16.msra.mxu1 %v3544_v6  ;;  %3063 = vmatprep.mubr.f32.mxu1 %v4389_v31  ;;  %v2488_v6 = vld [vmem:[%s5011_s1 + $0x188] sm:$0xff] }
  0x65   : > { %3285 = vmatmul.mubr.f32.gmra.mrb[8].mxu0 %v4603_v22  ;;  %3549 = vmatprep.subr.bf16.mxu1 %v3548_v23  ;;  %v3560_v21 = vpack.c.bf16 %v2488_v6, %v2487_v2  ;;  %v2493_v2 = vld [vmem:[%s5011_s1 + $0x1b0] sm:$0xff]  ;;  %v2494_v6 = vld [vmem:[%s5011_s1 + $0x1b8] sm:$0xff] }
  0x66   : > { %3675 = vmatpush3.bf16.msra.mxu0 %v3672_v12  ;;  %3287 = vmatprep.mubr.f32.mxu0 %v4608_v25  ;;  %v2615_v12 = vld [vmem:[%s5011_s1 + $0x380] sm:$0xff] }
  0x67   : > { %3064 = vmatmul.mubr.f32.gmra.mrb[10].mxu1 %v4409_v38  ;;  %3677 = vmatprep.subr.bf16.mxu0 %v3676_v30 }
  0x68   : > { %3551 = vmatpush3.bf16.msra.mxu1 %v3548_v23  ;;  %3066 = vmatprep.mubr.f32.mxu1 %v4417_v41  ;;  %v3688_v23 = vpack.c.bf16 %v2616_v13, %v2615_v12  ;;  %v3572_v12 = vpack.c.bf16 %v2494_v6, %v2493_v2  ;;  %v4770_v6 = vld [vmem:[%s4218_s4 + $0xc0] sm:$0xff] }
  0x69   : > { %3288 = vmatmul.mubr.f32.gmra.mrb[10].mxu0 %v4625_v40  ;;  %3553 = vmatprep.subr.bf16.mxu1 %v3552_v43 }
  0x6a   : > { %3679 = vmatpush3.bf16.msra.mxu0 %v3676_v30  ;;  %3290 = vmatprep.mubr.f32.mxu0 %v4630_v46  ;;  %v2489_v30 = vld [vmem:[%s5011_s1 + $0x190] sm:$0xff] }
  0x6b   : > { %3067 = vmatmul.mubr.f32.gmra.mrb[12].mxu1 %v4437_v48  ;;  %3681 = vmatprep.subr.bf16.mxu0 %v3680_v47 }
  0x6c   : > { %3555 = vmatpush3.bf16.msra.mxu1 %v3552_v43  ;;  %3069 = vmatprep.mubr.f32.mxu1 %v4445_v51  ;;  %v3564_v43 = vpack.c.bf16 %v2490_v33, %v2489_v30  ;;  %v2624_v30 = vld [vmem:[%s5011_s1 + $0x3c8] sm:$0xff] }
  0x6d   : > { %3291 = vmatmul.mubr.f32.gmra.mrb[12].mxu0 %v4647_v56  ;;  %3557 = vmatprep.subr.bf16.mxu1 %v3556_v57 }
  0x6e   : > { %3683 = vmatpush3.bf16.msra.mxu0 %v3680_v47  ;;  %3293 = vmatprep.mubr.f32.mxu0 %v4652_v60  ;;  %v3692_v47 = vpack.c.bf16 %v2618_v37, %v2617_v36  ;;  %v2497_v36 = vld [vmem:[%s5011_s1 + $0x1d0] sm:$0xff]  ;;  %v2498_v37 = vld [vmem:[%s5011_s1 + $0x1d8] sm:$0xff] }
  0x6f   : > { %3070 = vmatmul.mubr.f32.gmra.mrb[14].mxu1 %v4465_v58  ;;  %3685 = vmatprep.subr.bf16.mxu0 %v3684_v1 }
  0x70   : > { %3559 = vmatpush3.bf16.msra.mxu1 %v3556_v57  ;;  %3104 = vmatprep.mubr.f32.mxu1 %v657_v19  ;;  %v3568_v57 = vpack.c.bf16 %v2492_v61, %v2491_v29  ;;  %v2495_v19 = vld [vmem:[%s5011_s1 + $0x1c0] sm:$0xff]  ;;  %v3580_v29 = vpack.c.bf16 %v2498_v37, %v2497_v36  ;;  %v2648_v36 = vld [vmem:[%s5011_s1 + $0x408] sm:$0xff] }
  0x71   : > { %3294 = vmatmul.mubr.f32.gmra.mrb[14].mxu0 %v4669_v16  ;;  %3561 = vmatprep.subr.bf16.mxu1 %v3560_v21  ;;  %v2582_v37 = vld [vmem:[%s4218_s4 + $0xe0] sm:$0xff] }
  0x72   : > { %3687 = vmatpush3.bf16.msra.mxu0 %v3684_v1  ;;  %3328 = vmatprep.mubr.f32.mxu0 %v4329_v8  ;;  %v3696_v1 = vpack.c.bf16 %v2620_v53, %v2619_v50  ;;  %v2499_v50 = vld [vmem:[%s5011_s1 + $0x1e0] sm:$0xff]  ;;  %v2500_v53 = vld [vmem:[%s5011_s1 + $0x1e8] sm:$0xff] }
  0x73   : > { %3105 = vmatmul.mubr.f32.vlgmr.msra.gmra.mrb[0].mxu1 %v658_v34  ;;  %3689 = vmatprep.subr.bf16.mxu0 %v3688_v23  ;;  %v3584_v2 = vpack.c.bf16 %v2500_v53, %v2499_v50  ;;  %v2651_v50 = vld [vmem:[%s5011_s1 + $0x420] sm:$0xff]  ;;  %v2652_v53 = vld [vmem:[%s5011_s1 + $0x428] sm:$0xff] }
  0x74   : > { %3563 = vmatpush3.bf16.msra.mxu1 %v3560_v21  ;;  %3107 = vmatprep.mubr.f32.mxu1 %v4499_v15  ;;  %v2621_v15 = vld [vmem:[%s5011_s1 + $0x3b0] sm:$0xff]  ;;  %v2496_v21 = vld [vmem:[%s5011_s1 + $0x1c8] sm:$0xff] }
  0x75   : > { %3329 = vmatmul.mubr.f32.vlgmr.msra.gmra.mrb[0].mxu0 %v4343_v14  ;;  %3565 = vmatprep.subr.bf16.mxu1 %v3564_v43  ;;  %v3576_v33 = vpack.c.bf16 %v2496_v21, %v2495_v19  ;;  %v2630_v19 = vld [vmem:[%s5011_s1 + $0x3f8] sm:$0xff]  ;;  %v4787_v21 = vld [vmem:[%s4218_s4 + $0xc8] sm:$0xff] }
  0x76   : > { %3691 = vmatpush3.bf16.msra.mxu0 %v3688_v23  ;;  %3331 = vmatprep.mubr.f32.mxu0 %v4357_v18  ;;  %v2623_v23 = vld [vmem:[%s5011_s1 + $0x3c0] sm:$0xff] }
  0x77   : > { %3108 = vmatmul.mubr.f32.gmra.mrb[2].mxu1 %v4516_v26  ;;  %3693 = vmatprep.subr.bf16.mxu0 %v3692_v47  ;;  %v2622_v26 = vld [vmem:[%s5011_s1 + $0x3b8] sm:$0xff]  ;;  %v3704_v34 = vpack.c.bf16 %v2624_v30, %v2623_v23 }
  0x78   : > { %3567 = vmatpush3.bf16.msra.mxu1 %v3564_v43  ;;  %3110 = vmatprep.mubr.f32.mxu1 %v4520_v32  ;;  %v3700_v13 = vpack.c.bf16 %v2622_v26, %v2621_v15  ;;  %v2625_v43 = vld [vmem:[%s5011_s1 + $0x3d0] sm:$0xff]  ;;  %v2581_v30 = vld [vmem:[%s4218_s4 + $0xd8] sm:$0xff] }
  0x79   : > { %3332 = vmatmul.mubr.f32.gmra.mrb[2].mxu0 %v4371_v24  ;;  %3569 = vmatprep.subr.bf16.mxu1 %v3568_v57  ;;  %v2501_v26 = vld [vmem:[%s5011_s1 + $0x1f0] sm:$0xff] }
  0x7a   : > { %3695 = vmatpush3.bf16.msra.mxu0 %v3692_v47  ;;  %3334 = vmatprep.mubr.f32.mxu0 %v4385_v28  ;;  %v2626_v47 = vld [vmem:[%s5011_s1 + $0x3d8] sm:$0xff] }
  0x7b   : > { %3111 = vmatmul.mubr.f32.gmra.mrb[4].mxu1 %v4537_v42  ;;  %3697 = vmatprep.subr.bf16.mxu0 %v3696_v1  ;;  %v3708_v61 = vpack.c.bf16 %v2626_v47, %v2625_v43  ;;  %v2649_v47 = vld [vmem:[%s5011_s1 + $0x410] sm:$0xff] }
  0x7c   : > { %3571 = vmatpush3.bf16.msra.mxu1 %v3568_v57  ;;  %3113 = vmatprep.mubr.f32.mxu1 %v4542_v44  ;;  %v2627_v57 = vld [vmem:[%s5011_s1 + $0x3e0] sm:$0xff] }
  0x7d   : > { %3335 = vmatmul.mubr.f32.gmra.mrb[4].mxu0 %v4399_v35  ;;  %3573 = vmatprep.subr.bf16.mxu1 %v3572_v12 }
  0x7e   : > { %3699 = vmatpush3.bf16.msra.mxu0 %v3696_v1  ;;  %3337 = vmatprep.mubr.f32.mxu0 %v4413_v39  ;;  %v2628_v1 = vld [vmem:[%s5011_s1 + $0x3e8] sm:$0xff] }
  0x7f   : > { %3114 = vmatmul.mubr.f32.gmra.mrb[6].mxu1 %v4559_v52  ;;  %3701 = vmatprep.subr.bf16.mxu0 %v3700_v13  ;;  %v3712_v15 = vpack.c.bf16 %v2628_v1, %v2627_v57 }
  0x80   : > { %3575 = vmatpush3.bf16.msra.mxu1 %v3572_v12  ;;  %3116 = vmatprep.mubr.f32.mxu1 %v4564_v54  ;;  %v2502_v12 = vld [vmem:[%s5011_s1 + $0x1f8] sm:$0xff] }
  0x81   : > { %3338 = vmatmul.mubr.f32.gmra.mrb[6].mxu0 %v4427_v45  ;;  %3577 = vmatprep.subr.bf16.mxu1 %v3576_v33  ;;  %v3588_v23 = vpack.c.bf16 %v2502_v12, %v2501_v26 }
  0x82   : > { %3703 = vmatpush3.bf16.msra.mxu0 %v3700_v13  ;;  %3340 = vmatprep.mubr.f32.mxu0 %v4441_v49  ;;  %v2629_v13 = vld [vmem:[%s5011_s1 + $0x3f0] sm:$0xff] }
  0x83   : > { %3117 = vmatmul.mubr.f32.gmra.mrb[8].mxu1 %v4581_v3  ;;  %3705 = vmatprep.subr.bf16.mxu0 %v3704_v34 }
  0x84   : > { %3579 = vmatpush3.bf16.msra.mxu1 %v3576_v33  ;;  %3119 = vmatprep.mubr.f32.mxu1 %v4586_v9  ;;  %v3716_v33 = vpack.c.bf16 %v2630_v19, %v2629_v13 }
  0x85   : > { %3341 = vmatmul.mubr.f32.gmra.mrb[8].mxu0 %v4455_v55  ;;  %3581 = vmatprep.subr.bf16.mxu1 %v3580_v29 }
  0x86   : > { %3707 = vmatpush3.bf16.msra.mxu0 %v3704_v34  ;;  %3343 = vmatprep.mubr.f32.mxu0 %v4469_v59  ;;  %v2647_v34 = vld [vmem:[%s5011_s1 + $0x400] sm:$0xff] }
  0x87   : > { %3120 = vmatmul.mubr.f32.gmra.mrb[10].mxu1 %v4603_v22  ;;  %3709 = vmatprep.subr.bf16.mxu0 %v3708_v61  ;;  %v3720_v43 = vpack.c.bf16 %v2648_v36, %v2647_v34 }
  0x88   : > { %3583 = vmatpush3.bf16.msra.mxu1 %v3580_v29  ;;  %3122 = vmatprep.mubr.f32.mxu1 %v4608_v25  ;;  %v2650_v29 = vld [vmem:[%s5011_s1 + $0x418] sm:$0xff] }
  0x89   : > { %3344 = vmatmul.mubr.f32.gmra.mrb[10].mxu0 %v4483_v5  ;;  %3585 = vmatprep.subr.bf16.mxu1 %v3584_v2 }
  0x8a   : > { %3711 = vmatpush3.bf16.msra.mxu0 %v3708_v61  ;;  %3346 = vmatprep.mubr.f32.mxu0 %v4770_v6  ;;  %v3724_v61 = vpack.c.bf16 %v2650_v29, %v2649_v47 }
  0x8b   : > { %3123 = vmatmul.mubr.f32.gmra.mrb[12].mxu1 %v4625_v40  ;;  %3713 = vmatprep.subr.bf16.mxu0 %v3712_v15 }
  0x8c   : > { %3587 = vmatpush3.bf16.msra.mxu1 %v3584_v2  ;;  %3125 = vmatprep.mubr.f32.mxu1 %v4630_v46 }
  0x8d   : > { %3347 = vmatmul.mubr.f32.gmra.mrb[12].mxu0 %v4787_v21  ;;  %3589 = vmatprep.subr.bf16.mxu1 %v3588_v23 }
  0x8e   : > { %3715 = vmatpush3.bf16.msra.mxu0 %v3712_v15  ;;  %3349 = vmatprep.mubr.f32.mxu0 %v2581_v30 }
  0x8f   : > { %3126 = vmatmul.mubr.f32.gmra.mrb[14].mxu1 %v4647_v56  ;;  %3717 = vmatprep.subr.bf16.mxu0 %v3716_v33 }
  0x90   : > { %3591 = vmatpush3.bf16.msra.mxu1 %v3588_v23  ;;  %3160 = vmatprep.mubr.f32.mxu1 %v4302_v62  ;;  %v3728_v62 = vpack.c.bf16 %v2652_v53, %v2651_v50  ;;  %v4906_v23 = vld [vmem:[%s5012_s2] ss:$0 sm:$0xff] }
  0x91   : > { %3350 = vmatmul.mubr.f32.gmra.mrb[14].mxu0 %v2582_v37  ;;  %3752 = vmatprep.subr.bf16.mxu1 %v3720_v43 }
  0x92   : > { %3719 = vmatpush3.bf16.msra.mxu0 %v3716_v33  ;;  %3384 = vmatprep.mubr.f32.mxu0 %v4305_v0  ;;  %v2653_v0 = vld [vmem:[%s5011_s1 + $0x430] sm:$0xff] }
  0x93   : > { %3721 = vmatprep.subr.bf16.mxu0 %v3720_v43  ;;  %3161 = vmatmul.mubr.f32.vlgmr.msra.gmra.mrb[0].mxu1 %v4315_v4  ;;  %v2654_v4 = vld [vmem:[%s5011_s1 + $0x438] sm:$0xff] }
  0x94   : > { %3760 = vmatpush3.bf16.msra.mxu1 %v3720_v43  ;;  %3163 = vmatprep.mubr.f32.mxu1 %v4329_v8  ;;  %v2655_v8 = vld [vmem:[%s5011_s1 + $0x440] sm:$0xff] }
  0x95   : > { %3385 = vmatmul.mubr.f32.vlgmr.msra.gmra.mrb[0].mxu0 %v4325_v7  ;;  %3753 = vmatprep.subr.bf16.mxu1 %v3724_v61  ;;  %v3732_v7 = vpack.c.bf16 %v2654_v4, %v2653_v0 }
  0x96   : > { %3723 = vmatpush3.bf16.msra.mxu0 %v3720_v43  ;;  %3387 = vmatprep.mubr.f32.mxu0 %v4333_v10  ;;  %v2656_v10 = vld [vmem:[%s5011_s1 + $0x448] sm:$0xff] }
  0x97   : > { %3725 = vmatprep.subr.bf16.mxu0 %v3724_v61  ;;  %3164 = vmatmul.mubr.f32.gmra.mrb[2].mxu1 %v4343_v14  ;;  %v3736_v14 = vpack.c.bf16 %v2656_v10, %v2655_v8 }
  0x98   : > { %3761 = vmatpush3.bf16.msra.mxu1 %v3724_v61  ;;  %3166 = vmatprep.mubr.f32.mxu1 %v4357_v18  ;;  %v2658_v18 = vld [vmem:[%s5011_s1 + $0x458] sm:$0xff] }
  0x99   : > { %3388 = vmatmul.mubr.f32.gmra.mrb[2].mxu0 %v4353_v17  ;;  %3754 = vmatprep.subr.bf16.mxu1 %v3728_v62  ;;  %v2657_v17 = vld [vmem:[%s5011_s1 + $0x450] sm:$0xff] }
  0x9a   : > { %3727 = vmatpush3.bf16.msra.mxu0 %v3724_v61  ;;  %3390 = vmatprep.mubr.f32.mxu0 %v4361_v20  ;;  %v3740_v20 = vpack.c.bf16 %v2658_v18, %v2657_v17 }
  0x9b   : > { %3729 = vmatprep.subr.bf16.mxu0 %v3728_v62  ;;  %3167 = vmatmul.mubr.f32.gmra.mrb[4].mxu1 %v4371_v24  ;;  %v2659_v24 = vld [vmem:[%s5011_s1 + $0x460] sm:$0xff] }
  0x9c   : > { %3762 = vmatpush3.bf16.msra.mxu1 %v3728_v62  ;;  %3169 = vmatprep.mubr.f32.mxu1 %v4385_v28 }
  0x9d   : > { %3391 = vmatmul.mubr.f32.gmra.mrb[4].mxu0 %v4381_v27  ;;  %3755 = vmatprep.subr.bf16.mxu1 %v3732_v7  ;;  %v2660_v27 = vld [vmem:[%s5011_s1 + $0x468] sm:$0xff] }
  0x9e   : > { %3731 = vmatpush3.bf16.msra.mxu0 %v3728_v62  ;;  %3393 = vmatprep.mubr.f32.mxu0 %v4389_v31  ;;  %v3744_v28 = vpack.c.bf16 %v2660_v27, %v2659_v24  ;;  %v2661_v31 = vld [vmem:[%s5011_s1 + $0x470] sm:$0xff] }
  0x9f   : > { %3733 = vmatprep.subr.bf16.mxu0 %v3732_v7  ;;  %3170 = vmatmul.mubr.f32.gmra.mrb[6].mxu1 %v4399_v35  ;;  %v2662_v35 = vld [vmem:[%s5011_s1 + $0x478] sm:$0xff] }
  0xa0   : > { %3763 = vmatpush3.bf16.msra.mxu1 %v3732_v7  ;;  %3172 = vmatprep.mubr.f32.mxu1 %v4413_v39  ;;  %v2613_v39 = vld [vmem:[%s4218_s4 + $0xd9] sm:$0xff] }
  0xa1   : > { %3394 = vmatmul.mubr.f32.gmra.mrb[6].mxu0 %v4409_v38  ;;  %3756 = vmatprep.subr.bf16.mxu1 %v3736_v14  ;;  %v3748_v38 = vpack.c.bf16 %v2662_v35, %v2661_v31 }
  0xa2   : > { %3735 = vmatpush3.bf16.msra.mxu0 %v3732_v7  ;;  %3396 = vmatprep.mubr.f32.mxu0 %v4417_v41  ;;  %v2614_v41 = vld [vmem:[%s4218_s4 + $0xe1] sm:$0xff] }
  0xa3   : > { %3737 = vmatprep.subr.bf16.mxu0 %v3736_v14  ;;  %3173 = vmatmul.mubr.f32.gmra.mrb[8].mxu1 %v4427_v45  ;;  %v2645_v45 = vld [vmem:[%s4218_s4 + $0xda] sm:$0xff] }
  0xa4   : > { %3764 = vmatpush3.bf16.msra.mxu1 %v3736_v14  ;;  %3175 = vmatprep.mubr.f32.mxu1 %v4441_v49 }
  0xa5   : > { %3397 = vmatmul.mubr.f32.gmra.mrb[8].mxu0 %v4437_v48  ;;  %3757 = vmatprep.subr.bf16.mxu1 %v3740_v20  ;;  %v2646_v48 = vld [vmem:[%s4218_s4 + $0xe2] sm:$0xff]  ;;  %s218_s4 = sand.u32 1, %s4041_s13  }
  0xa6   : > { %3739 = vmatpush3.bf16.msra.mxu0 %v3736_v14  ;;  %3399 = vmatprep.mubr.f32.mxu0 %v4445_v51  ;;  %s2437_s20 = sshll.u32 %s218_s4, 7  ;;  %s4958_s10 = scalar_lea.sflag [#allocation4], %s218_s4 }
  0xa7   : > { %3741 = vmatprep.subr.bf16.mxu0 %v3740_v20  ;;  %3176 = vmatmul.mubr.f32.gmra.mrb[10].mxu1 %v4455_v55  ;;  %s4911_s27 = scalar_lea.vmem [#allocation3], %s2437_s20  ;;  %s3975_s20 = sshll.u32 %s4067_s8, 4  ;;  %s3976_s20 = int_to_ptr.vmem [resolvable:$false] %s3975_s20 }
  0xa8   : > { %3765 = vmatpush3.bf16.msra.mxu1 %v3740_v20  ;;  %3178 = vmatprep.mubr.f32.mxu1 %v4469_v59  ;;  %s2314_s7 = sshll.u32 %s4911_s27, 4  ;;  %s3977_s21 = scalar_lea.vmem %s3976_s20, 4096  ;;  %s4949_s7 = int_to_ptr.vmem [resolvable:$true] %s2314_s7 }
  0xa9   : > { %3400 = vmatmul.mubr.f32.gmra.mrb[10].mxu0 %v4465_v58  ;;  %3758 = vmatprep.subr.bf16.mxu1 %v3744_v28  ;;  %s3971_s11 = scalar_lea.vmem %s4949_s7, 2048  ;;  %p3978_p4 = scmp.lt.s32.totalorder %s4949_s7, %s3976_s20 }
  0xaa   : > { %3743 = vmatpush3.bf16.msra.mxu0 %v3740_v20  ;;  %3402 = vmatprep.mubr.f32.mxu0 %v4473_v63  ;;  %p3972_p0 = scmp.ne.s32.totalorder %s4949_s7, %s3971_s11  ;;  %p3979_p5 = scmp.lt.s32.totalorder %s3977_s21, %s3971_s11 }
  0xab   : > { %3745 = vmatprep.subr.bf16.mxu0 %v3744_v28  ;;  %3179 = vmatmul.mubr.f32.gmra.mrb[12].mxu1 %v4483_v5 }
  0xac   : > { %3766 = vmatpush3.bf16.msra.mxu1 %v3744_v28  ;;  %3181 = vmatprep.mubr.f32.mxu1 %v4770_v6  ;;  %p3973_p1 = pnand %p3972_p0, %p4141_p3  ;;  %p3980_p6 = por %p3979_p5, %p3978_p4 }
  0xad   : > { %3403 = vmatmul.mubr.f32.gmra.mrb[12].mxu0 %v4493_v11  ;;  %3759 = vmatprep.subr.bf16.mxu1 %v3748_v38 }
  0xae   : > { %3747 = vmatpush3.bf16.msra.mxu0 %v3744_v28  ;;  %3405 = vmatprep.mubr.f32.mxu0 %v2613_v39  ;;  %p3974_p2 = pneg %p3973_p1 }
  0xaf   : > { %3749 = vmatprep.subr.bf16.mxu0 %v3748_v38  ;;  %3182 = vmatmul.mubr.f32.gmra.mrb[14].mxu1 %v4787_v21 }
  0xb0   : > { %3767 = vmatpush3.bf16.msra.mxu1 %v3748_v38  ;;  %3452 = vmatprep.mubr.f32.mxu1 %v4608_v25  ;;  %p3981_p7 = pnand %p3980_p6, %p3974_p2 }
  0xb1   : > { %3406 = vmatmul.mubr.f32.gmra.mrb[14].mxu0 %v2614_v41 }
  0xb2   : > { %3751 = vmatpush3.bf16.msra.mxu0 %v3748_v38  ;;  %3440 = vmatprep.mubr.f32.mxu0 %v4520_v32 }
  0xb3   : > { %3453 = vmatmul.mubr.f32.vlgmr.msra.gmra.mrb[16].mxu1 %v4625_v40 }
  0xb4   : > { %3455 = vmatprep.mubr.f32.mxu1 %v4630_v46 }
  0xb5   : > { %3441 = vmatmul.mubr.f32.vlgmr.msra.gmra.mrb[0].mxu0 %v4537_v42 }
  0xb6   : > { %3443 = vmatprep.mubr.f32.mxu0 %v4542_v44 }
  0xb7   : > { %3456 = vmatmul.mubr.f32.gmra.mrb[18].mxu1 %v4647_v56 }
  0xb8   : > { %3458 = vmatprep.mubr.f32.mxu1 %v4652_v60 }
  0xb9   : > { %3444 = vmatmul.mubr.f32.gmra.mrb[2].mxu0 %v4559_v52 }
  0xba   : > { %3446 = vmatprep.mubr.f32.mxu0 %v4564_v54 }
  0xbb   : > { %3459 = vmatmul.mubr.f32.gmra.mrb[20].mxu1 %v4669_v16 }
  0xbc   : > { %3461 = vmatprep.mubr.f32.mxu1 %v2645_v45 }
  0xbd   : > { %3447 = vmatmul.mubr.f32.gmra.mrb[4].mxu0 %v4581_v3 }
  0xbe   : > { %3449 = vmatprep.mubr.f32.mxu0 %v4586_v9 }
  0xbf   : > { %3462 = vmatmul.mubr.f32.gmra.mrb[22].mxu1 %v2646_v48 }
  0xc1   : > { %3450 = vmatmul.mubr.f32.gmra.mrb[6].mxu0 %v4603_v22 }
 0x166   : > { %v3162_v49 = vpop.f32.mrb[0].mxu1 }
 0x167   : > { %v983_v51 = vpop.f32.mrb[1].mxu1 }
 0x16a   : > { %v3165_v55 = vpop.f32.mrb[2].mxu1 }
 0x16b   : > { %v993_v58 = vpop.f32.mrb[3].mxu1 }
 0x16e   : > { %v4892_v59 = vpop.f32.mrb[4].mxu1 }
 0x16f   : > { %v4894_v63 = vpop.f32.mrb[5].mxu1 }
 0x172   : > { %v4896_v5 = vpop.f32.mrb[6].mxu1 }
 0x173   : > { %v4898_v11 = vpop.f32.mrb[7].mxu1 }
 0x176   : > { %v3174_v32 = vpop.f32.mrb[8].mxu1 }
 0x177   : > { %v1023_v44 = vpop.f32.mrb[9].mxu1 }
 0x178   : > { %v3398_v42 = vpop.f32.mrb[8].mxu0 }
 0x179   : > { %v3776_v52 = vadd.f32 %v3398_v42, %v3174_v32  ;;  %v1928_v54 = vpop.f32.mrb[9].mxu0 }
 0x17a   : > { %v3778_v3 = vadd.f32 %v1928_v54, %v1023_v44  ;;  %v3177_v9 = vpop.f32.mrb[10].mxu1 }
 0x17b   : > { %v1033_v25 = vpop.f32.mrb[11].mxu1 }
 0x17c   : > { %v3401_v22 = vpop.f32.mrb[10].mxu0 }
 0x17d   : > { %v3780_v40 = vadd.f32 %v3401_v22, %v3177_v9  ;;  %v1938_v46 = vpop.f32.mrb[11].mxu0 }
 0x17e   : > { %v3782_v56 = vadd.f32 %v1938_v46, %v1033_v25  ;;  %v3180_v60 = vpop.f32.mrb[12].mxu1 }
 0x17f   : > { %v1043_v57 = vpop.f32.mrb[13].mxu1 }
 0x180   : > { %v3404_v16 = vpop.f32.mrb[12].mxu0 }
 0x181   : > { %v3784_v1 = vadd.f32 %v3404_v16, %v3180_v60  ;;  %v1948_v2 = vpop.f32.mrb[13].mxu0 }
 0x182   : > { %v3786_v6 = vadd.f32 %v1948_v2, %v1043_v57  ;;  %v3183_v15 = vpop.f32.mrb[14].mxu1 }
 0x183   : > { %v1053_v12 = vpop.f32.mrb[15].mxu1 }
 0x184   : > { %v3407_v26 = vpop.f32.mrb[14].mxu0 }
 0x185   : > { %v3788_v13 = vadd.f32 %v3407_v26, %v3183_v15  ;;  %v1958_v19 = vpop.f32.mrb[15].mxu0 }
 0x186   : > { %v3790_v21 = vadd.f32 %v1958_v19, %v1053_v12  ;;  %v3454_v30 = vpop.f32.mrb[16].mxu1 }
 0x187   : > { %v3777_v34 = vadd.f32 %v3776_v52, %v3454_v30  ;;  %v2154_v36 = vpop.f32.mrb[17].mxu1 }
 0x188   : > { %v3442_v33 = vpop.f32.mrb[0].mxu0  ;;  %v3779_v47 = vadd.f32 %v3778_v3, %v2154_v36 }
 0x189   : > { %v3768_v37 = vadd.f32 %v3442_v33, %v3162_v49  ;;  %v2114_v43 = vpop.f32.mrb[1].mxu0  ;;  %v2273_v29 = vadd.f32 %v3777_v34, %v4906_v23 }
 0x18a   : > { %v3769_v61 = vadd.f32 %v2114_v43, %v983_v51  ;;  %v2272_v53 = vadd.f32 %v3779_v47, %v4906_v23  ;;  %v3457_v62 = vpop.f32.mrb[18].mxu1 }
 0x18b   : > { %v2265_v50 = vadd.f32 %v3768_v37, %v4906_v23  ;;  %2289 = vst [vmem:[%s4911_s27 + $0x48] sm:$0xff] %v2273_v29  ;;  %v3781_v7 = vadd.f32 %v3780_v40, %v3457_v62  ;;  %v2164_v8 = vpop.f32.mrb[19].mxu1 }
 0x18c   : > { %v2264_v0 = vadd.f32 %v3769_v61, %v4906_v23  ;;  %v3445_v4 = vpop.f32.mrb[2].mxu0  ;;  %2288 = vst [vmem:[%s4911_s27 + $0x40] sm:$0xff] %v2272_v53  ;;  %v3783_v17 = vadd.f32 %v3782_v56, %v2164_v8 }
 0x18d   : > { %2281 = vst [vmem:[%s4911_s27 + $0x8] sm:$0xff] %v2265_v50  ;;  %v3770_v10 = vadd.f32 %v3445_v4, %v3165_v55  ;;  %v2124_v14 = vpop.f32.mrb[3].mxu0  ;;  %v2275_v18 = vadd.f32 %v3781_v7, %v4906_v23 }
 0x18e   : > { %2280 = vst [vmem:[%s4911_s27] sm:$0xff] %v2264_v0  ;;  %v3771_v20 = vadd.f32 %v2124_v14, %v993_v58  ;;  %v2274_v27 = vadd.f32 %v3783_v17, %v4906_v23  ;;  %v3460_v28 = vpop.f32.mrb[20].mxu1 }
 0x18f   : > { %v2267_v24 = vadd.f32 %v3770_v10, %v4906_v23  ;;  %2291 = vst [vmem:[%s4911_s27 + $0x58] sm:$0xff] %v2275_v18  ;;  %v3785_v38 = vadd.f32 %v3784_v1, %v3460_v28  ;;  %v2174_v39 = vpop.f32.mrb[21].mxu1 }
 0x190   : > { %v2266_v31 = vadd.f32 %v3771_v20, %v4906_v23  ;;  %v3448_v35 = vpop.f32.mrb[4].mxu0  ;;  %2290 = vst [vmem:[%s4911_s27 + $0x50] sm:$0xff] %v2274_v27  ;;  %v3787_v48 = vadd.f32 %v3786_v6, %v2174_v39 }
 0x191   : > { %2283 = vst [vmem:[%s4911_s27 + $0x18] sm:$0xff] %v2267_v24  ;;  %v3772_v41 = vadd.f32 %v3448_v35, %v4892_v59  ;;  %v2134_v45 = vpop.f32.mrb[5].mxu0  ;;  %v2277_v49 = vadd.f32 %v3785_v38, %v4906_v23 }
 0x192   : > { %2282 = vst [vmem:[%s4911_s27 + $0x10] sm:$0xff] %v2266_v31  ;;  %v3773_v51 = vadd.f32 %v2134_v45, %v4894_v63  ;;  %v2276_v58 = vadd.f32 %v3787_v48, %v4906_v23  ;;  %v3463_v32 = vpop.f32.mrb[22].mxu1 }
 0x193   : > { %v2269_v55 = vadd.f32 %v3772_v41, %v4906_v23  ;;  %2293 = vst [vmem:[%s4911_s27 + $0x68] sm:$0xff] %v2277_v49  ;;  %v3789_v44 = vadd.f32 %v3788_v13, %v3463_v32  ;;  %v2184_v52 = vpop.f32.mrb[23].mxu1 }
 0x194   : > { %v2268_v59 = vadd.f32 %v3773_v51, %v4906_v23  ;;  %v3451_v42 = vpop.f32.mrb[6].mxu0  ;;  %2292 = vst [vmem:[%s4911_s27 + $0x60] sm:$0xff] %v2276_v58  ;;  %v3791_v3 = vadd.f32 %v3790_v21, %v2184_v52 }
 0x195   : > { %2285 = vst [vmem:[%s4911_s27 + $0x28] sm:$0xff] %v2269_v55  ;;  %v3774_v63 = vadd.f32 %v3451_v42, %v4896_v5  ;;  %v2144_v54 = vpop.f32.mrb[7].mxu0  ;;  %v2279_v9 = vadd.f32 %v3789_v44, %v4906_v23 }
 0x196   : > { %2284 = vst [vmem:[%s4911_s27 + $0x20] sm:$0xff] %v2268_v59  ;;  %v3775_v22 = vadd.f32 %v2144_v54, %v4898_v11  ;;  %v2278_v40 = vadd.f32 %v3791_v3, %v4906_v23 }
 0x197   : > { %v2271_v25 = vadd.f32 %v3774_v63, %v4906_v23  ;;  %2295 = vst [vmem:[%s4911_s27 + $0x78] sm:$0xff] %v2279_v9 }
 0x198   : > { %v2270_v5 = vadd.f32 %v3775_v22, %v4906_v23  ;;  %2294 = vst [vmem:[%s4911_s27 + $0x70] sm:$0xff] %v2278_v40 }
 0x199   : > { %2287 = vst [vmem:[%s4911_s27 + $0x38] sm:$0xff] %v2271_v25 }
 0x19a   : > { %2286 = vst [vmem:[%s4911_s27 + $0x30] sm:$0xff] %v2270_v5 }
 0x19b   : > { %3984 = shalt.err (!%p3981_p7)
}
 0x19c   : > { %s3985_s4 = scalar_lea.hbm %s4947_s9, 2048  ;;  %s3989_s5 = scalar_lea.hbm %s5013_s3, 8192 }
 0x19d   : > { %p3986_p9 = scmp.ne.s32.totalorder %s4947_s9, %s3985_s4  ;;  %p3990_p12 = scmp.lt.u32.totalorder %s4947_s9, %s5013_s3 }
 0x19e   : > { %p3991_p13 = scmp.lt.u32.totalorder %s3989_s5, %s3985_s4  ;;  %p3993_p1 = scmp.lt.u32.totalorder %s3985_s4, %s4947_s9 }
 0x19f   : > { %p3987_p10 = pnand %p3986_p9, %p4141_p3 }
 0x1a0   : > { %p3992_p0 = por %p3991_p13, %p3990_p12 }
 0x1a1   : > { %p3988_p11 = pneg %p3987_p10 }
 0x1a2   : > { %p3994_p2 = por %p3993_p1, %p3992_p0 }
 0x1a4   : > { %p3995_p4 = pnand %p3994_p2, %p3988_p11 }
 0x1a6   : > { %3998 = shalt.err (!%p3995_p4)
}
 0x1a7   : > { %s4068_s16 = smov 128   ;;  %s4069_s28 = smov 8  }
 0x1a8   : > { %3898 = dma.vmem_to_hbm [thread:$0]  (%p4141_p3), %s4949_s7, 2048, %s4947_s9, %s4958_s10, %s4068_s16, %s4068_s16, %s4069_s28  }
 0x1a9 PF: > { %p3904_p5 = scmp.ge.s32.totalorder %s4065_s19, 2  ;;  %s2329_s29 = sand.u32 1, %s4037_s12  }
 0x1aa   : > { %s2330_s11 = scalar_lea.sflag [#allocation4], %s2329_s29 }
 0x1ab   : > { %p3901_p6 = pnand %p3904_p5, %p4150_p8 }
 0x1ad   : > { %4032 = dma.done.wait (!%p3901_p6), %s2330_s11, 2048  }
 0x1ae   : > { %4034 = vsyncadd (!%p3901_p6), %s2330_s11, 4294965248  ;;  %s16_s19 = sadd.s32 1, %s4065_s19   ;;  %s5016_s12 = smov %s4041_s13 }
 0x1af   : > { %p13_p7 = scmp.ge.s32.totalorder %s16_s19, 6   ;;  %s5017_s13 = smov %s4045_s14 }
 0x1b0   : > { %s5018_s14 = smov %s4159_s30  ;;  %s5019_s15 = smov %s4057_s17 }
 0x1b1   : > { %s5020_s16 = smov %s4061_s18  ;;  %s5021_s17 = smov %s5024_s22 }
 0x1b2   : > { %s5022_s18 = smov %s5028_s23  ;;  %15 = sbr.rel (!%p13_p7) target bundleno = 5 (0x5), region = 83 }
 0x1b9   :  { %2335 = vsyncpa [#allocation4], 1 }
 0x1ba   :  { %2337 = vsyncpa [#allocation4 + $0x1], 1 }

</bundles_post_ra>
